<compile_context>
chip_gen: v7x
topology: tpu7x:2x2x1
jax: 0.10.0
libtpu: 0.0.40
codegen_flags: <defaults>
</compile_context>

<pallas_src>
import functools

import jax
import jax.numpy as jnp
from jax.experimental import pallas as pl
from jax.experimental.pallas import tpu as pltpu


_LANE = 128     # TPU lane width: channel axes are padded to a multiple of this


def _round_up(x, m):
    return (x + m - 1) // m * m


def _tpu_vmem_capacity():
    """Per-core VMEM bytes (generation aware); conservative fallback."""
    try:
        cap = int(pltpu.get_tpu_info().vmem_capacity_bytes)
        if cap > 0:
            return cap
    except Exception:
        pass
    return 64 << 20    # v7x per-core physical VMEM (the tightest generation)


def _vmem_bytes(W, TH, K0, Cmid_p, Cout_p):
    """Rough per-step VMEM footprint (double-buffered blocks + scratch + temps)."""
    P0 = (TH + 4) * W
    P1 = (TH + 2) * W
    M = TH * W
    in_blk = 2 * P0 * K0 * 2                               # bf16 input tile (x2 bufs)
    out_blk = 2 * M * Cout_p * 2                           # bf16 output tile (x2 bufs)
    w_blk = 2 * (3 * K0 * Cmid_p * 2                       # w1cat
                 + 3 * 3 * Cmid_p * Cout_p * 2             # w2cat
                 + 2 * (Cmid_p + Cout_p) * 4)              # scales / shifts
    scratch = P1 * 3 * Cmid_p * 2                          # y1cat VMEM scratch (bf16)
    temps = 6 * P1 * Cmid_p * 4 + M * Cout_p * 4           # f32 intermediates in flight
    return in_blk + out_blk + w_blk + scratch + temps


def _pick_tile_h(H, W, K0, Cmid_p, Cout_p, budget):
    """Largest row-tile dividing H whose working set fits the VMEM budget."""
    for th in range(H, 0, -1):
        if H % th == 0 and _vmem_bytes(W, th, K0, Cmid_p, Cout_p) <= budget:
            return th
    return 1


def _block_kernel(x_ref, w1_ref, s1_ref, b1_ref, w2_ref, s2_ref, b2_ref,
                  o_ref, y1cat_ref, *, tile_h, width):
    """One (batch, row-tile) step of Block.forward (eval-mode BN folded).

    x_ref     : (1, 1, P0, 3*Cin)        bf16  raw input tile, flat row-major,
                                               width-wise 3-tap channel concat,
                                               rows = TH + 4 (2-row halo each side)
    w1_ref    : (3, 3*Cin, Cmid_p)       bf16  conv1 weights, one slab per dh tap
    s1/b1     : (1, Cmid_p)              f32   BN1 (+conv1 bias) folded scale/shift
    w2_ref    : (3, 3*Cmid_p, Cout_p)    bf16  conv2 weights, one slab per dh tap
    s2/b2     : (1, Cout_p)              f32   BN2 (+conv2 bias) folded scale/shift
    o_ref     : (1, 1, TH*W, Cout_p)     bf16  output tile (flat, lane-dense)
    y1cat_ref : (P1, 3*Cmid_p)           bf16  VMEM scratch: column-concatenated
                                               fused intermediate (P1=(TH+2)*W)
    """
    W = width
    TH = tile_h
    P1 = (TH + 2) * W
    M = TH * W
    cmid = s1_ref.shape[-1]
    slab = y1cat_ref.shape[-1]
    t = pl.program_id(1)
    n_t = pl.num_programs(1)

    # ---------- stage 1: conv1 (3 row-shifted matmuls, K=3*Cin) + BN1 + ReLU --
    # y1 flat row p (= (image_row+1)*W + col) tap dh reads input flat row p+dh*W;
    # the +-1 column taps are already folded into the 3*Cin channel concat.
    xv = x_ref[0, 0]                                            # (P0, 3*Cin) bf16
    acc1 = jnp.dot(xv[0:P1], w1_ref[0], preferred_element_type=jnp.float32)
    acc1 = acc1 + jnp.dot(xv[W:W + P1], w1_ref[1],
                          preferred_element_type=jnp.float32)
    acc1 = acc1 + jnp.dot(xv[2 * W:2 * W + P1], w1_ref[2],
                          preferred_element_type=jnp.float32)
    y1 = jnp.maximum(acc1 * s1_ref[...] + b1_ref[...], 0.0)     # (P1, Cmid_p) f32

    # ---------- build column-concatenated intermediate for stage 2 -----------
    # y1cat[p] = [ y1[p-1]*(col>0) | y1[p] | y1[p+1]*(col<W-1) ]  (one store,
    # 2 selects total; replaces 6 per-tap edge masks + 8 accumulator RMWs).
    col = jax.lax.broadcasted_iota(jnp.int32, (P1, 1), 0) % W
    zrow = jnp.zeros((1, cmid), jnp.float32)
    y1_up = jnp.concatenate([zrow, y1[:P1 - 1]], axis=0)        # y1[p-1]
    y1_dn = jnp.concatenate([y1[1:], zrow], axis=0)             # y1[p+1]
    s0 = jnp.where(col > 0, y1_up, 0.0)
    s2 = jnp.where(col < W - 1, y1_dn, 0.0)
    y1cat_ref[...] = jnp.concatenate([s0, y1, s2],
                                     axis=-1).astype(y1cat_ref.dtype)

    # conv2 zero-pads outside the image: blank the halo row above the first
    # image row (first tile) / below the last image row (last tile).  Any halo
    # leakage into neighbouring y1cat rows is already killed by the col masks.
    @pl.when(t == 0)
    def _():
        y1cat_ref[0:W, :] = jnp.zeros((W, slab), y1cat_ref.dtype)

    @pl.when(t == n_t - 1)
    def _():
        y1cat_ref[P1 - W:P1, :] = jnp.zeros((W, slab), y1cat_ref.dtype)

    # ---------- stage 2: conv2 as 3 matmuls (K=3*Cmid_p) + BN2 + ReLU ---------
    acc2 = jnp.dot(y1cat_ref[0:M, :], w2_ref[0],
                   preferred_element_type=jnp.float32)
    acc2 = acc2 + jnp.dot(y1cat_ref[W:W + M, :], w2_ref[1],
                          preferred_element_type=jnp.float32)
    acc2 = acc2 + jnp.dot(y1cat_ref[2 * W:2 * W + M, :], w2_ref[2],
                          preferred_element_type=jnp.float32)
    y2 = jnp.maximum(acc2 * s2_ref[...] + b2_ref[...], 0.0)     # f32 epilogue
    o_ref[...] = y2.astype(o_ref.dtype).reshape(o_ref.shape)    # lane-dense bf16 store


def block_forward(x_nchw, folded, *, tile_h=None):
    """Forward pass of `Block` (eval-mode BN) for an NCHW input, via one fused
    Pallas call.  `folded` comes from `fold_block_params`."""
    N, Cin, H, W = map(int, x_nchw.shape)
    w1, w2 = folded["w1"], folded["w2"]          # HWIO (3,3,Cin,Cmid), (3,3,Cmid,Cout)
    Cmid, Cout = int(w1.shape[-1]), int(w2.shape[-1])
    Cmid_p, Cout_p = _round_up(Cmid, _LANE), _round_up(Cout, _LANE)
    K0 = 3 * Cin

    cap = _tpu_vmem_capacity()
    if tile_h is None:
        # ~40% of physical VMEM: ~51 MiB on v5e/v6e (128 MiB), ~25 MiB on v7x (64 MiB)
        tile_h = _pick_tile_h(H, W, K0, Cmid_p, Cout_p,
                              budget=min((cap * 2) // 5, 56 << 20))
    assert H % tile_h == 0, f"tile_h={tile_h} must divide H={H}"
    TH = tile_h
    n_t = H // TH
    P0, P1, M = (TH + 4) * W, (TH + 2) * W, TH * W

    est = _vmem_bytes(W, TH, K0, Cmid_p, Cout_p)
    assert est <= int(cap * 0.45), (
        f"tile_h={TH} needs ~{est >> 20} MiB VMEM (cap {cap >> 20} MiB); shrink it")

    # ---- XLA-side prep (tiny vs. the removed 9x im2col): NHWC + bf16, one
    # ---- spatial pad, width-wise 3-tap channel concat, overlapping row tiles.
    x = jnp.transpose(x_nchw, (0, 2, 3, 1)).astype(jnp.bfloat16)     # NHWC
    xp = jnp.pad(x, ((0, 0), (2, 2), (1, 1), (0, 0)))                # rows +-2, cols +-1
    xcols = jnp.concatenate(
        [xp[:, :, dw:dw + W, :] for dw in range(3)], axis=-1)        # (N, H+4, W, 3*Cin)
    tiles = jnp.stack([xcols[:, i * TH:i * TH + TH + 4] for i in range(n_t)],
                      axis=1)                                        # (N, n_t, TH+4, W, K0)
    tiles = tiles.reshape(N, n_t, P0, K0)

    # Channel-pad weights / scale / shift to 128 lanes (full MXU lanes, unmasked
    # stores).  Padded channels carry zero weight/scale/shift.
    w1cat = jnp.zeros((3, K0, Cmid_p), jnp.bfloat16)
    w1cat = w1cat.at[:, :, :Cmid].set(w1.reshape(3, K0, Cmid).astype(jnp.bfloat16))
    w2p = jnp.zeros((3, 3, Cmid_p, Cout_p), jnp.bfloat16)
    w2p = w2p.at[:, :, :Cmid, :Cout].set(w2.astype(jnp.bfloat16))
    w2cat = w2p.reshape(3, 3 * Cmid_p, Cout_p)                       # matches y1cat slabs
    s1 = jnp.zeros((1, Cmid_p), jnp.float32).at[0, :Cmid].set(folded["scale1"])
    b1 = jnp.zeros((1, Cmid_p), jnp.float32).at[0, :Cmid].set(folded["shift1"])
    s2 = jnp.zeros((1, Cout_p), jnp.float32).at[0, :Cout].set(folded["scale2"])
    b2 = jnp.zeros((1, Cout_p), jnp.float32).at[0, :Cout].set(folded["shift2"])

    kernel = functools.partial(_block_kernel, tile_h=TH, width=W)
    vmem_limit = int(min(cap - (2 << 20), max(est + (8 << 20), 32 << 20)))
    out = pl.pallas_call(
        kernel,
        out_shape=jax.ShapeDtypeStruct((N, n_t, M, Cout_p), jnp.bfloat16),
        grid=(N, n_t),
        in_specs=[
            pl.BlockSpec((1, 1, P0, K0), lambda n, t: (n, t, 0, 0)),
            pl.BlockSpec((3, K0, Cmid_p), lambda n, t: (0, 0, 0)),
            pl.BlockSpec((1, Cmid_p), lambda n, t: (0, 0)),
            pl.BlockSpec((1, Cmid_p), lambda n, t: (0, 0)),
            pl.BlockSpec((3, 3 * Cmid_p, Cout_p), lambda n, t: (0, 0, 0)),
            pl.BlockSpec((1, Cout_p), lambda n, t: (0, 0)),
            pl.BlockSpec((1, Cout_p), lambda n, t: (0, 0)),
        ],
        out_specs=pl.BlockSpec((1, 1, M, Cout_p), lambda n, t: (n, t, 0, 0)),
        scratch_shapes=[
            pltpu.VMEM((P1, 3 * Cmid_p), jnp.bfloat16),   # fused intermediate (y1cat)
        ],
        compiler_params=pltpu.CompilerParams(
            dimension_semantics=("parallel", "parallel"),
            vmem_limit_bytes=vmem_limit),
    )(tiles, w1cat, s1, b1, w2cat, s2, b2)

    # NOTE: a fused NHWC consumer could take `out` directly (no slice/transpose).
    y = out.reshape(N, H, W, Cout_p)[..., :Cout]
    return jnp.transpose(y, (0, 3, 1, 2)).astype(jnp.float32)        # back to NCHW


# ----------------------------- parameter folding -----------------------------
def _fold_separable(spatial_w, spatial_b, point_w, point_b):
    """Fold depthwise-3x3 (C,1,3,3) + pointwise-1x1 (Co,C,1,1) into one dense
    3x3 conv (exact: the composition is itself a 3x3 conv)."""
    pw = point_w[:, :, 0, 0]                                    # (Co, C)
    dense = jnp.einsum('cij,oc->ijco', spatial_w[:, 0], pw)     # HWIO (3,3,C,Co)
    bias = point_b + pw @ spatial_b
    return dense, bias


def _fold_bn(bias, gamma, beta, mean, var, eps=1e-5):
    scale = gamma / jnp.sqrt(var + eps)
    shift = beta + (bias - mean) * scale
    return scale, shift


def fold_block_params(raw, eps=1e-5):
    """Fold Block's separable conv pairs + eval-mode BatchNorm into the dense
    weights / per-channel scale+shift consumed by the Pallas kernel."""
    w1, c1b = _fold_separable(raw["sw1"], raw["sb1"], raw["pw1"], raw["pb1"])
    w2, c2b = _fold_separable(raw["sw2"], raw["sb2"], raw["pw2"], raw["pb2"])
    s1, b1 = _fold_bn(c1b, raw["g1"], raw["b1"], raw["m1"], raw["v1"], eps)
    s2, b2 = _fold_bn(c2b, raw["g2"], raw["b2"], raw["m2"], raw["v2"], eps)
    return {"w1": w1, "scale1": s1, "shift1": b1,
            "w2": w2, "scale2": s2, "shift2": b2}


def make_raw_params(key, in_filters, out_filters):
    """Random parameters matching Block(in_filters, out_filters, seperable=True)."""
    ks = jax.random.split(key, 16)
    n = jax.random.normal
    ci, co = in_filters, out_filters
    return {
        "sw1": 0.3 * n(ks[0], (ci, 1, 3, 3), jnp.float32),   # spatial1 (depthwise)
        "sb1": 0.1 * n(ks[1], (ci,), jnp.float32),
        "pw1": 0.3 * n(ks[2], (co, ci, 1, 1), jnp.float32),  # depth1 (pointwise)
        "pb1": 0.1 * n(ks[3], (co,), jnp.float32),
        "g1": 1.0 + 0.1 * n(ks[4], (co,), jnp.float32),      # batchnorm1
        "b1": 0.1 * n(ks[5], (co,), jnp.float32),
        "m1": 0.1 * n(ks[6], (co,), jnp.float32),
        "v1": 0.5 + jnp.abs(n(ks[7], (co,), jnp.float32)),
        "sw2": 0.3 * n(ks[8], (co, 1, 3, 3), jnp.float32),   # spatial2
        "sb2": 0.1 * n(ks[9], (co,), jnp.float32),
        "pw2": 0.3 * n(ks[10], (co, co, 1, 1), jnp.float32), # depth2
        "pb2": 0.1 * n(ks[11], (co,), jnp.float32),
        "g2": 1.0 + 0.1 * n(ks[12], (co,), jnp.float32),     # batchnorm2
        "b2": 0.1 * n(ks[13], (co,), jnp.float32),
        "m2": 0.1 * n(ks[14], (co,), jnp.float32),
        "v2": 0.5 + jnp.abs(n(ks[15], (co,), jnp.float32)),
    }


# --------------------------------- references --------------------------------
def block_reference_f32(x_nchw, raw, eps=1e-5):
    """Literal f32 JAX port of Block.forward (seperable=True, eval-mode BN)."""
    dn = ("NHWC", "HWIO", "NHWC")
    x = jnp.transpose(x_nchw, (0, 2, 3, 1))

    def depthwise(y, w_oihw, b):
        c = y.shape[-1]
        w = jnp.transpose(w_oihw, (2, 3, 1, 0))                 # (3,3,1,C)
        y = jax.lax.conv_general_dilated(y, w, (1, 1), "SAME",
                                         dimension_numbers=dn,
                                         feature_group_count=c)
        return y + b

    def pointwise(y, w_oihw, b):
        w = jnp.transpose(w_oihw, (2, 3, 1, 0))                 # (1,1,Ci,Co)
        y = jax.lax.conv_general_dilated(y, w, (1, 1), "SAME",
                                         dimension_numbers=dn)
        return y + b

    def bn(y, g, b, m, v):
        return (y - m) / jnp.sqrt(v + eps) * g + b

    y = pointwise(depthwise(x, raw["sw1"], raw["sb1"]), raw["pw1"], raw["pb1"])
    y = jnp.maximum(bn(y, raw["g1"], raw["b1"], raw["m1"], raw["v1"]), 0.0)
    y = pointwise(depthwise(y, raw["sw2"], raw["sb2"]), raw["pw2"], raw["pb2"])
    y = jnp.maximum(bn(y, raw["g2"], raw["b2"], raw["m2"], raw["v2"]), 0.0)
    return jnp.transpose(y, (0, 3, 1, 2))


def block_reference_bf16(x_nchw, folded):
    """Reference matching the kernel's numerics (bf16 operands, f32 accumulate,
    bf16 intermediate, bf16 output) - used for the tight correctness check."""
    dn = ("NHWC", "HWIO", "NHWC")

    def conv(y, w):
        return jax.lax.conv_general_dilated(
            y, w.astype(jnp.bfloat16), (1, 1), "SAME", dimension_numbers=dn,
            preferred_element_type=jnp.float32)

    x = jnp.transpose(x_nchw, (0, 2, 3, 1)).astype(jnp.bfloat16)
    y = conv(x, folded["w1"]) * folded["scale1"] + folded["shift1"]
    y = jnp.maximum(y, 0.0).astype(jnp.bfloat16)
    y = conv(y, folded["w2"]) * folded["scale2"] + folded["shift2"]
    y = jnp.maximum(y, 0.0).astype(jnp.bfloat16).astype(jnp.float32)
    return jnp.transpose(y, (0, 3, 1, 2))


if __name__ == "__main__":
    key = jax.random.PRNGKey(0)
    k_x, k_p = jax.random.split(key)

    N, Cin, Cout, H, W = 2, 4, 8, 16, 16
    x = jax.random.normal(k_x, (N, Cin, H, W), jnp.float32)      # NCHW, like PyTorch
    raw = make_raw_params(k_p, Cin, Cout)
    folded = fold_block_params(raw)

    # tile_h=4 exercises first / interior / last-tile halo handling; the second
    # call uses the generation-aware auto tile chooser (whole image at this size).
    out = jax.block_until_ready(block_forward(x, folded, tile_h=4))
    out_auto = jax.block_until_ready(block_forward(x, folded))
    assert out.shape == (N, Cout, H, W), out.shape
    assert out_auto.shape == (N, Cout, H, W), out_auto.shape

    ref_q = jax.block_until_ready(block_reference_bf16(x, folded))
    for name, o in (("tiled", out), ("auto", out_auto)):
        err_q = float(jnp.max(jnp.abs(o - ref_q)))
        assert jnp.allclose(o, ref_q, atol=2e-2, rtol=2e-2), (
            f"[{name}] mismatch vs bf16-matched reference: max abs err {err_q}")

    ref = jax.block_until_ready(block_reference_f32(x, raw))
    err = float(jnp.max(jnp.abs(out - ref)))
    assert err < 0.15, f"mismatch vs f32 module reference (max abs err {err})"

    print("KERNEL_OK")
</pallas_src>

<mosaic_0001>
module attributes {stable_mosaic.version = 11 : i64} {
  func.func @_block_kernel(%arg0: i32, %arg1: i32, %arg2: memref<1x1x128x12xbf16, #tpu.memory_space<vmem>>, %arg3: memref<3x12x128xbf16, #tpu.memory_space<vmem>>, %arg4: memref<1x128xf32, #tpu.memory_space<vmem>>, %arg5: memref<1x128xf32, #tpu.memory_space<vmem>>, %arg6: memref<3x384x128xbf16, #tpu.memory_space<vmem>>, %arg7: memref<1x128xf32, #tpu.memory_space<vmem>>, %arg8: memref<1x128xf32, #tpu.memory_space<vmem>>, %arg9: memref<1x1x64x128xbf16, #tpu.memory_space<vmem>>, %arg10: memref<96x384xbf16, #tpu.memory_space<vmem>>) attributes {dimension_semantics = [#tpu.dimension_semantics<parallel>, #tpu.dimension_semantics<parallel>], iteration_bounds = array<i64: 2, 4>, scalar_prefetch = 0 : i64, scratch_operands = 1 : i64, tpu.core_type = #tpu.core_type<tc>, window_params = [{transform_indices = @transform_0, window_bounds = array<i64: 1, 1, 128, 12>}, {pipeline_mode = #tpu.pipeline_mode<synchronous>, transform_indices = @transform_1, window_bounds = array<i64: 3, 12, 128>}, {pipeline_mode = #tpu.pipeline_mode<synchronous>, transform_indices = @transform_2, window_bounds = array<i64: 1, 128>}, {pipeline_mode = #tpu.pipeline_mode<synchronous>, transform_indices = @transform_3, window_bounds = array<i64: 1, 128>}, {pipeline_mode = #tpu.pipeline_mode<synchronous>, transform_indices = @transform_4, window_bounds = array<i64: 3, 384, 128>}, {pipeline_mode = #tpu.pipeline_mode<synchronous>, transform_indices = @transform_5, window_bounds = array<i64: 1, 128>}, {pipeline_mode = #tpu.pipeline_mode<synchronous>, transform_indices = @transform_6, window_bounds = array<i64: 1, 128>}, {transform_indices = @transform_7, window_bounds = array<i64: 1, 1, 64, 128>}]} {
    %c0 = arith.constant 0 : index
    %c0_0 = arith.constant 0 : index
    %c0_1 = arith.constant 0 : index
    %c0_2 = arith.constant 0 : index
    %0 = vector.load %arg2[%c0, %c0_0, %c0_1, %c0_2] : memref<1x1x128x12xbf16, #tpu.memory_space<vmem>>, vector<1x1x128x12xbf16>
    %1 = vector.shape_cast %0 : vector<1x1x128x12xbf16> to vector<128x12xbf16>
    %2 = vector.extract_strided_slice %1 {offsets = [0, 0], sizes = [96, 12], strides = [1, 1]} : vector<128x12xbf16> to vector<96x12xbf16>
    %c0_3 = arith.constant 0 : index
    %c0_4 = arith.constant 0 : index
    %c0_5 = arith.constant 0 : index
    %3 = vector.load %arg3[%c0_3, %c0_4, %c0_5] : memref<3x12x128xbf16, #tpu.memory_space<vmem>>, vector<1x12x128xbf16>
    %4 = vector.shape_cast %3 : vector<1x12x128xbf16> to vector<12x128xbf16>
    %cst = arith.constant dense<0.000000e+00> : vector<96x128xf32>
    %5 = tpu.matmul %2, %4, %cst {dimension_numbers = #tpu.dot_dimension_numbers<[1], [0], [0], [1], [0, 0, 1, 1], [], []>} : vector<96x12xbf16>, vector<12x128xbf16>, vector<96x128xf32> -> vector<96x128xf32>
    %6 = vector.extract_strided_slice %1 {offsets = [16, 0], sizes = [96, 12], strides = [1, 1]} : vector<128x12xbf16> to vector<96x12xbf16>
    %c1 = arith.constant 1 : index
    %c0_6 = arith.constant 0 : index
    %c0_7 = arith.constant 0 : index
    %7 = vector.load %arg3[%c1, %c0_6, %c0_7] : memref<3x12x128xbf16, #tpu.memory_space<vmem>>, vector<1x12x128xbf16>
    %8 = vector.shape_cast %7 : vector<1x12x128xbf16> to vector<12x128xbf16>
    %cst_8 = arith.constant dense<0.000000e+00> : vector<96x128xf32>
    %9 = tpu.matmul %6, %8, %cst_8 {dimension_numbers = #tpu.dot_dimension_numbers<[1], [0], [0], [1], [0, 0, 1, 1], [], []>} : vector<96x12xbf16>, vector<12x128xbf16>, vector<96x128xf32> -> vector<96x128xf32>
    %10 = arith.addf %5, %9 : vector<96x128xf32>
    %11 = vector.extract_strided_slice %1 {offsets = [32, 0], sizes = [96, 12], strides = [1, 1]} : vector<128x12xbf16> to vector<96x12xbf16>
    %c2 = arith.constant 2 : index
    %c0_9 = arith.constant 0 : index
    %c0_10 = arith.constant 0 : index
    %12 = vector.load %arg3[%c2, %c0_9, %c0_10] : memref<3x12x128xbf16, #tpu.memory_space<vmem>>, vector<1x12x128xbf16>
    %13 = vector.shape_cast %12 : vector<1x12x128xbf16> to vector<12x128xbf16>
    %cst_11 = arith.constant dense<0.000000e+00> : vector<96x128xf32>
    %14 = tpu.matmul %11, %13, %cst_11 {dimension_numbers = #tpu.dot_dimension_numbers<[1], [0], [0], [1], [0, 0, 1, 1], [], []>} : vector<96x12xbf16>, vector<12x128xbf16>, vector<96x128xf32> -> vector<96x128xf32>
    %15 = arith.addf %10, %14 : vector<96x128xf32>
    %c0_12 = arith.constant 0 : index
    %c0_13 = arith.constant 0 : index
    %16 = vector.load %arg4[%c0_12, %c0_13] : memref<1x128xf32, #tpu.memory_space<vmem>>, vector<1x128xf32>
    %17 = vector.broadcast %16 : vector<1x128xf32> to vector<96x128xf32>
    %18 = arith.mulf %15, %17 : vector<96x128xf32>
    %c0_14 = arith.constant 0 : index
    %c0_15 = arith.constant 0 : index
    %19 = vector.load %arg5[%c0_14, %c0_15] : memref<1x128xf32, #tpu.memory_space<vmem>>, vector<1x128xf32>
    %20 = vector.broadcast %19 : vector<1x128xf32> to vector<96x128xf32>
    %21 = arith.addf %18, %20 : vector<96x128xf32>
    %cst_16 = arith.constant 0.000000e+00 : f32
    %22 = vector.broadcast %cst_16 : f32 to vector<96x128xf32>
    %23 = arith.maximumf %21, %22 : vector<96x128xf32>
    %24 = tpu.iota {dimensions = array<i32: 0>} : vector<96x1xi32>
    %c16_i32 = arith.constant 16 : i32
    %c0_i32 = arith.constant 0 : i32
    %25 = arith.cmpi eq, %c16_i32, %c0_i32 : i32
    %c1_i32 = arith.constant 1 : i32
    %26 = arith.select %25, %c1_i32, %c16_i32 : i32
    %27 = vector.broadcast %26 : i32 to vector<96x1xi32>
    %28 = arith.remsi %24, %27 : vector<96x1xi32>
    %c0_i32_17 = arith.constant 0 : i32
    %29 = vector.broadcast %c0_i32_17 : i32 to vector<96x1xi32>
    %30 = arith.cmpi ne, %28, %29 : vector<96x1xi32>
    %c0_i32_18 = arith.constant 0 : i32
    %31 = vector.broadcast %c0_i32_18 : i32 to vector<96x1xi32>
    %32 = arith.cmpi slt, %28, %31 : vector<96x1xi32>
    %c0_i32_19 = arith.constant 0 : i32
    %33 = arith.cmpi slt, %26, %c0_i32_19 : i32
    %34 = vector.broadcast %33 : i1 to vector<96x1xi1>
    %35 = vector.broadcast %34 : vector<96x1xi1> to vector<96x1xi1>
    %36 = arith.xori %32, %35 : vector<96x1xi1>
    %37 = arith.andi %36, %30 : vector<96x1xi1>
    %38 = vector.broadcast %26 : i32 to vector<96x1xi32>
    %39 = arith.addi %28, %38 : vector<96x1xi32>
    %40 = arith.select %37, %39, %28 : vector<96x1xi1>, vector<96x1xi32>
    %cst_20 = arith.constant 0.000000e+00 : f32
    %41 = vector.broadcast %cst_20 : f32 to vector<1x128xf32>
    %42 = vector.extract_strided_slice %23 {offsets = [0, 0], sizes = [95, 128], strides = [1, 1]} : vector<96x128xf32> to vector<95x128xf32>
    %43 = tpu.concatenate %41, %42 in 0 : vector<1x128xf32>, vector<95x128xf32> -> vector<96x128xf32>
    %44 = vector.extract_strided_slice %23 {offsets = [1, 0], sizes = [95, 128], strides = [1, 1]} : vector<96x128xf32> to vector<95x128xf32>
    %45 = tpu.concatenate %44, %41 in 0 : vector<95x128xf32>, vector<1x128xf32> -> vector<96x128xf32>
    %c0_i32_21 = arith.constant 0 : i32
    %46 = vector.broadcast %c0_i32_21 : i32 to vector<96x1xi32>
    %47 = arith.cmpi sgt, %40, %46 : vector<96x1xi32>
    %cst_22 = arith.constant 0.000000e+00 : f32
    %48 = vector.shape_cast %47 : vector<96x1xi1> to vector<96x1xi1>
    %49 = vector.broadcast %48 : vector<96x1xi1> to vector<96x128xi1>
    %50 = vector.broadcast %cst_22 : f32 to vector<96x128xf32>
    %51 = arith.select %49, %43, %50 : vector<96x128xi1>, vector<96x128xf32>
    %c15_i32 = arith.constant 15 : i32
    %52 = vector.broadcast %c15_i32 : i32 to vector<96x1xi32>
    %53 = arith.cmpi slt, %40, %52 : vector<96x1xi32>
    %cst_23 = arith.constant 0.000000e+00 : f32
    %54 = vector.shape_cast %53 : vector<96x1xi1> to vector<96x1xi1>
    %55 = vector.broadcast %54 : vector<96x1xi1> to vector<96x128xi1>
    %56 = vector.broadcast %cst_23 : f32 to vector<96x128xf32>
    %57 = arith.select %55, %45, %56 : vector<96x128xi1>, vector<96x128xf32>
    %58 = tpu.concatenate %51, %23, %57 in 1 : vector<96x128xf32>, vector<96x128xf32>, vector<96x128xf32> -> vector<96x384xf32>
    %59 = arith.truncf %58 : vector<96x384xf32> to vector<96x384xbf16>
    %c0_24 = arith.constant 0 : index
    %c0_25 = arith.constant 0 : index
    %60 = vector.load %arg10[%c0_24, %c0_25] : memref<96x384xbf16, #tpu.memory_space<vmem>>, vector<96x384xbf16>
    tpu.vector_store %arg10[%c0_24, %c0_25], %59 {strides = array<i32>} : memref<96x384xbf16, #tpu.memory_space<vmem>>, vector<96x384xbf16>,
    %c0_i32_26 = arith.constant 0 : i32
    %61 = arith.cmpi eq, %arg1, %c0_i32_26 : i32
    %62 = arith.extui %61 : i1 to i32
    %c0_i32_27 = arith.constant 0 : i32
    %63 = arith.cmpi ne, %62, %c0_i32_27 : i32
    scf.if %63 {
      %cst_54 = arith.constant 0.000000e+00 : bf16
      %92 = vector.broadcast %cst_54 : bf16 to vector<16x384xbf16>
      %c0_55 = arith.constant 0 : index
      %c0_56 = arith.constant 0 : index
      %93 = vector.load %arg10[%c0_55, %c0_56] : memref<96x384xbf16, #tpu.memory_space<vmem>>, vector<16x384xbf16>
      tpu.vector_store %arg10[%c0_55, %c0_56], %92 {strides = array<i32>} : memref<96x384xbf16, #tpu.memory_space<vmem>>, vector<16x384xbf16>,
    } else {
    }
    %c3_i32 = arith.constant 3 : i32
    %64 = arith.cmpi eq, %arg1, %c3_i32 : i32
    %65 = arith.extui %64 : i1 to i32
    %c0_i32_28 = arith.constant 0 : i32
    %66 = arith.cmpi ne, %65, %c0_i32_28 : i32
    scf.if %66 {
      %cst_54 = arith.constant 0.000000e+00 : bf16
      %92 = vector.broadcast %cst_54 : bf16 to vector<16x384xbf16>
      %c80 = arith.constant 80 : index
      %c0_55 = arith.constant 0 : index
      %93 = vector.load %arg10[%c80, %c0_55] : memref<96x384xbf16, #tpu.memory_space<vmem>>, vector<16x384xbf16>
      tpu.vector_store %arg10[%c80, %c0_55], %92 {strides = array<i32>} : memref<96x384xbf16, #tpu.memory_space<vmem>>, vector<16x384xbf16>,
    } else {
    }
    %c0_29 = arith.constant 0 : index
    %c0_30 = arith.constant 0 : index
    %67 = vector.load %arg10[%c0_29, %c0_30] : memref<96x384xbf16, #tpu.memory_space<vmem>>, vector<64x384xbf16>
    %c0_31 = arith.constant 0 : index
    %c0_32 = arith.constant 0 : index
    %c0_33 = arith.constant 0 : index
    %68 = vector.load %arg6[%c0_31, %c0_32, %c0_33] : memref<3x384x128xbf16, #tpu.memory_space<vmem>>, vector<1x384x128xbf16>
    %69 = vector.shape_cast %68 : vector<1x384x128xbf16> to vector<384x128xbf16>
    %cst_34 = arith.constant dense<0.000000e+00> : vector<64x128xf32>
    %70 = tpu.matmul %67, %69, %cst_34 {dimension_numbers = #tpu.dot_dimension_numbers<[1], [0], [0], [1], [0, 0, 1, 1], [], []>} : vector<64x384xbf16>, vector<384x128xbf16>, vector<64x128xf32> -> vector<64x128xf32>
    %c16 = arith.constant 16 : index
    %c0_35 = arith.constant 0 : index
    %71 = vector.load %arg10[%c16, %c0_35] : memref<96x384xbf16, #tpu.memory_space<vmem>>, vector<64x384xbf16>
    %c1_36 = arith.constant 1 : index
    %c0_37 = arith.constant 0 : index
    %c0_38 = arith.constant 0 : index
    %72 = vector.load %arg6[%c1_36, %c0_37, %c0_38] : memref<3x384x128xbf16, #tpu.memory_space<vmem>>, vector<1x384x128xbf16>
    %73 = vector.shape_cast %72 : vector<1x384x128xbf16> to vector<384x128xbf16>
    %cst_39 = arith.constant dense<0.000000e+00> : vector<64x128xf32>
    %74 = tpu.matmul %71, %73, %cst_39 {dimension_numbers = #tpu.dot_dimension_numbers<[1], [0], [0], [1], [0, 0, 1, 1], [], []>} : vector<64x384xbf16>, vector<384x128xbf16>, vector<64x128xf32> -> vector<64x128xf32>
    %75 = arith.addf %70, %74 : vector<64x128xf32>
    %c32 = arith.constant 32 : index
    %c0_40 = arith.constant 0 : index
    %76 = vector.load %arg10[%c32, %c0_40] : memref<96x384xbf16, #tpu.memory_space<vmem>>, vector<64x384xbf16>
    %c2_41 = arith.constant 2 : index
    %c0_42 = arith.constant 0 : index
    %c0_43 = arith.constant 0 : index
    %77 = vector.load %arg6[%c2_41, %c0_42, %c0_43] : memref<3x384x128xbf16, #tpu.memory_space<vmem>>, vector<1x384x128xbf16>
    %78 = vector.shape_cast %77 : vector<1x384x128xbf16> to vector<384x128xbf16>
    %cst_44 = arith.constant dense<0.000000e+00> : vector<64x128xf32>
    %79 = tpu.matmul %76, %78, %cst_44 {dimension_numbers = #tpu.dot_dimension_numbers<[1], [0], [0], [1], [0, 0, 1, 1], [], []>} : vector<64x384xbf16>, vector<384x128xbf16>, vector<64x128xf32> -> vector<64x128xf32>
    %80 = arith.addf %75, %79 : vector<64x128xf32>
    %c0_45 = arith.constant 0 : index
    %c0_46 = arith.constant 0 : index
    %81 = vector.load %arg7[%c0_45, %c0_46] : memref<1x128xf32, #tpu.memory_space<vmem>>, vector<1x128xf32>
    %82 = vector.broadcast %81 : vector<1x128xf32> to vector<64x128xf32>
    %83 = arith.mulf %80, %82 : vector<64x128xf32>
    %c0_47 = arith.constant 0 : index
    %c0_48 = arith.constant 0 : index
    %84 = vector.load %arg8[%c0_47, %c0_48] : memref<1x128xf32, #tpu.memory_space<vmem>>, vector<1x128xf32>
    %85 = vector.broadcast %84 : vector<1x128xf32> to vector<64x128xf32>
    %86 = arith.addf %83, %85 : vector<64x128xf32>
    %cst_49 = arith.constant 0.000000e+00 : f32
    %87 = vector.broadcast %cst_49 : f32 to vector<64x128xf32>
    %88 = arith.maximumf %86, %87 : vector<64x128xf32>
    %89 = arith.truncf %88 : vector<64x128xf32> to vector<64x128xbf16>
    %90 = vector.shape_cast %89 : vector<64x128xbf16> to vector<1x1x64x128xbf16>
    %c0_50 = arith.constant 0 : index
    %c0_51 = arith.constant 0 : index
    %c0_52 = arith.constant 0 : index
    %c0_53 = arith.constant 0 : index
    %91 = vector.load %arg9[%c0_50, %c0_51, %c0_52, %c0_53] : memref<1x1x64x128xbf16, #tpu.memory_space<vmem>>, vector<1x1x64x128xbf16>
    tpu.vector_store %arg9[%c0_50, %c0_51, %c0_52, %c0_53], %90 {strides = array<i32>} : memref<1x1x64x128xbf16, #tpu.memory_space<vmem>>, vector<1x1x64x128xbf16>,
    return
  }
  func.func @transform_0(%arg0: i32, %arg1: i32) -> (i32, i32, i32, i32) {
    %c0_i32 = arith.constant 0 : i32
    %c0_i32_0 = arith.constant 0 : i32
    %c0_i32_1 = arith.constant 0 : i32
    return %arg0, %arg1, %c0_i32, %c0_i32_0 : i32, i32, i32, i32
  }
  func.func @transform_1(%arg0: i32, %arg1: i32) -> (i32, i32, i32) {
    %c0_i32 = arith.constant 0 : i32
    %c0_i32_0 = arith.constant 0 : i32
    %c0_i32_1 = arith.constant 0 : i32
    %c0_i32_2 = arith.constant 0 : i32
    return %c0_i32, %c0_i32_0, %c0_i32_1 : i32, i32, i32
  }
  func.func @transform_2(%arg0: i32, %arg1: i32) -> (i32, i32) {
    %c0_i32 = arith.constant 0 : i32
    %c0_i32_0 = arith.constant 0 : i32
    %c0_i32_1 = arith.constant 0 : i32
    return %c0_i32, %c0_i32_0 : i32, i32
  }
  func.func @transform_3(%arg0: i32, %arg1: i32) -> (i32, i32) {
    %c0_i32 = arith.constant 0 : i32
    %c0_i32_0 = arith.constant 0 : i32
    %c0_i32_1 = arith.constant 0 : i32
    return %c0_i32, %c0_i32_0 : i32, i32
  }
  func.func @transform_4(%arg0: i32, %arg1: i32) -> (i32, i32, i32) {
    %c0_i32 = arith.constant 0 : i32
    %c0_i32_0 = arith.constant 0 : i32
    %c0_i32_1 = arith.constant 0 : i32
    %c0_i32_2 = arith.constant 0 : i32
    return %c0_i32, %c0_i32_0, %c0_i32_1 : i32, i32, i32
  }
  func.func @transform_5(%arg0: i32, %arg1: i32) -> (i32, i32) {
    %c0_i32 = arith.constant 0 : i32
    %c0_i32_0 = arith.constant 0 : i32
    %c0_i32_1 = arith.constant 0 : i32
    return %c0_i32, %c0_i32_0 : i32, i32
  }
  func.func @transform_6(%arg0: i32, %arg1: i32) -> (i32, i32) {
    %c0_i32 = arith.constant 0 : i32
    %c0_i32_0 = arith.constant 0 : i32
    %c0_i32_1 = arith.constant 0 : i32
    return %c0_i32, %c0_i32_0 : i32, i32
  }
  func.func @transform_7(%arg0: i32, %arg1: i32) -> (i32, i32, i32, i32) {
    %c0_i32 = arith.constant 0 : i32
    %c0_i32_0 = arith.constant 0 : i32
    %c0_i32_1 = arith.constant 0 : i32
    return %arg0, %arg1, %c0_i32, %c0_i32_0 : i32, i32, i32, i32
  }
}

</mosaic_0001>

<bundles_post_ra>
// kernel: tpu_custom_call.1
= control target key start
LH: loop header
LB: loop body
LE: loop exit
PB: predicated region body
PF: predicated region fallthrough
CT: control target
= control target key end

     0   :  { %12 = vsyncpa [#allocation4], 0  ;;  %s3630_s0 = inlined_call_operand.vmem [shape: bf16[2,4,128,12], index: 0, kind: input, shape index: {}]   ;;  %s3631_s1 = inlined_call_operand.vmem [shape: bf16[3,12,128], index: 1, kind: input, shape index: {}]   ;;  %s3632_s2 = inlined_call_operand.vmem [shape: f32[1,128], index: 2, kind: input, shape index: {}]   ;;  %s3633_s3 = inlined_call_operand.vmem [shape: f32[1,128], index: 3, kind: input, shape index: {}]   ;;  %s3634_s4 = inlined_call_operand.hbm [shape: bf16[3,384,128], index: 4, kind: input, shape index: {}]   ;;  %s3635_s5 = inlined_call_operand.vmem [shape: f32[1,128], index: 5, kind: input, shape index: {}]   ;;  %s3636_s6 = inlined_call_operand.vmem [shape: f32[1,128], index: 6, kind: input, shape index: {}]   ;;  %s3637_s7 = inlined_call_operand.hbm [shape: bf16[2,4,64,128], index: 7, kind: output, shape index: {}]  }
   0x1   :  { %13 = vsyncpa [#allocation5], 0 }
   0x2   :  { %15 = vsyncpa [#allocation5 + $0x1], 0  ;;  %s3195_s24 = smov 0   ;;  %s3197_s25 = smov 0  }
   0x3   :  { %s3199_s26 = smov 0   ;;  %s3201_s27 = smov 0  }
   0x4   :  { %s3203_s28 = smov 0   ;;  %s3205_s29 = smov 0  }
   0x5   :  { %s3207_s30 = smov 0   ;;  %s3209_s8 = smov 0  }
   0x6 LB: > { %s2323_s9 = sadd.s32 4294967295, %s3145_s8   ;;  %s2324_s10 = sadd.s32 4294967294, %s3145_s8   ;;  %s3145_s8 = sphi %s3209_s8, %s21_s8   ;;  %s3141_s30 = sphi %s3207_s30, %s3689_s30   ;;  %s3137_s29 = sphi %s3205_s29, %s3688_s29   ;;  %s3133_s28 = sphi %s3203_s28, %s3687_s28   ;;  %s3129_s27 = sphi %s3201_s27, %s3686_s27   ;;  %s3125_s26 = sphi %s3199_s26, %s3685_s26   ;;  %s3121_s25 = sphi %s3197_s25, %s3684_s25   ;;  %s3117_s24 = sphi %s3195_s24, %s3683_s24  }
   0x7   : > { %s30_s11 = sadd.s32 1, %s3137_s29  ;;  %s33_s12 = sadd.s32 1, %s3141_s30 }
   0x8   : > { %p31_p0 = scmp.ge.s32.totalorder %s30_s11, 4  ;;  %s196_s13 = sadd.s32 1, %s3125_s26 }
   0x9   : > { %p206_p1 = scmp.ne.s32.totalorder %s3125_s26, %s3121_s25  ;;  %p207_p2 = scmp.eq.s32.totalorder %s2323_s9, 7 }
   0xa   : > { %s3691_s11 = smov (%p31_p0, %s30_s11), 0  ;;  %s3693_s12 = smov (!%p31_p0, %s33_s12), %s3141_s30 }
   0xb   : > { %3645 = sst [smem:[#allocation9_spill]] %s3691_s11  ;;  %s192_s14 = ssub.s32 %s3137_s29, %s3691_s11 }
   0xc   : > { %p3247_p3 = por %p207_p2, %p206_p1  ;;  %p35_p4 = scmp.ge.s32.totalorder %s3693_s12, 2 }
   0xd   : > { %p212_p5 = scmp.ne.s32.totalorder %s3121_s25, %s3117_s24  ;;  %p213_p6 = scmp.eq.s32.totalorder %s2324_s10, 7 }
   0xe   : > { %s3646_s15 = scalar_select %p3247_p3, 1, 0 }
   0xf   : > { %p2325_p7 = scmp.ge.s32.totalorder %s3145_s8, 1  ;;  %s3695_s12 = smov (%p35_p4, %s3693_s12), 0 }
  0x10   : > { %3647 = sst [smem:[#allocation10_spill]] %s3695_s12  ;;  %p3256_p8 = por %p213_p6, %p212_p5 }
  0x11   : > { %p220_p9 = scmp.lt.s32.totalorder %s3145_s8, 9  ;;  %s191_s17 = ssub.s32 %s3141_s30, %s3695_s12 }
  0x12   : > { %s3648_s16 = scalar_select %p3256_p8, 1, 0 }
  0x13   : > { %s193_s18 = sor.u32 %s192_s14, %s191_s17  ;;  %p3263_p10 = pnand %p2325_p7, %p220_p9 }
  0x14   : > { %p194_p11 = scmp.eq.s32.totalorder %s193_s18, 0  ;;  %p3267_p12 = scmp.eq.s32.totalorder %s2323_s9, 0 }
  0x15   : > { %s3649_s19 = scalar_select %p3263_p10, 1, 0 }
  0x16   : > { %s3650_s20 = scalar_select %p3267_p12, 1, 0 }
  0x17   : > { %p2854_p13 = pneg %p3263_p10  ;;  %s3147_s22 = smov [#allocation3]  }
  0x18   : > { %s3274_s21 = scalar_select %p194_p11, %s3125_s26, %s196_s13  }
  0x19   : > { %s241_s23 = sshll.u32 %s3147_s22, 4  ;;  %p3278_p0 = pnand %p3267_p12, %p2854_p13  ;;  %s242_s23 = int_to_ptr.vmem [resolvable:$true] %s241_s23 }
  0x1a   : > { %s3019_s9 = scalar_lea.hbm %s3634_s4, 9216 }
  0x1b   : > { %p3020_p1 = scmp.ne.s32.totalorder %s3634_s4, %s3019_s9  ;;  %p3021_p2 = pneg %p3278_p0 }
  0x1c   : > { %p3026_p6 = scmp.lt.u32.totalorder %s3019_s9, %s3634_s4 }
  0x1d   : > { %p3022_p4 = pnand %p3021_p2, %p3020_p1 }
  0x1f   : > { %p3023_p5 = pneg %p3022_p4 }
  0x21   : > { %p3028_p7 = pnand %p3026_p6, %p3023_p5 }
  0x23   : > { %3031 = shalt.err (!%p3028_p7)
}
  0x24   : > { %s3032_s11 = scalar_lea.vmem %s242_s23, 9216  ;;  %p3040_p8 = scmp.lt.s32.totalorder %s242_s23, %s242_s23 }
  0x25   : > { %p3033_p9 = scmp.ne.s32.totalorder %s242_s23, %s3032_s11  ;;  %p3041_p3 = scmp.lt.s32.totalorder %s3032_s11, %s3032_s11 }
  0x27   : > { %p3035_p11 = pnand %p3033_p9, %p3021_p2  ;;  %p3042_p12 = por %p3041_p3, %p3040_p8 }
  0x29   : > { %p3036_p13 = pneg %p3035_p11 }
  0x2b   : > { %p3043_p10 = pnand %p3042_p12, %p3036_p13 }
  0x2d   : > { %3046 = shalt.err (!%p3043_p10)
}
  0x2e   : > { %s3148_s12 = smov 64   ;;  %s3149_s14 = smov 4  }
  0x2f   : > { %2857 = dma.hbm_to_vmem [thread:$0]  (!%p3278_p0), %s3634_s4, 9216, %s242_s23, [#allocation4], %s3148_s12, %s3148_s12, %s3149_s14  }
  0x30   : > { %p3652_p1 = scmp.ne.s32.totalorder %s3649_s19, 0 }
  0x31   : > { %p3653_p4 = scmp.ne.s32.totalorder (!%p3652_p1), %s3650_s20, 0 }
  0x32   : > { %275 = sbr.rel (%p3652_p1) target bundleno = 756 (0x2f4), region = 48 }
  0x39   : > { %3108 = dma.done.wait (%p3653_p4), [#allocation4], 9216  }
  0x3a   : > { %3110 = vsyncadd (%p3653_p4), [#allocation4], 4294958080  ;;  %s3644_s11 = sand.u32 1, %s3121_s25   ;;  %p311_p3 = scmp.lt.s32.totalorder %s3133_s28, 1  ;;  %vm396_vm0 = vcmask 1045504   ;;  %vm377_vm1 = vcmask 97280   ;;  %v740_v14 = vlaneseq }
  0x3b   : > { %s3308_s10 = sshll.u32 %s3644_s11, 5  ;;  %p313_p8 = scmp.lt.s32.totalorder %s3129_s27, 3  ;;  %v2936_v0 = vld [vmem:[%s3631_s1 + $0x8] sm:$0x3f]   ;;  %v2939_v2 = vld [vmem:[%s3631_s1] sm:$0x3f]  }
  0x3c   : > { %s312_s19 = scalar_select %p311_p3, %s3133_s28, 1  ;;  %2845 = vmatprep.subr.msk.bf16.mxu0 %vm396_vm0, %v2936_v0  ;;  %v398_v1 = vsel %vm396_vm0, %v2936_v0, 0  ;;  %v495_v5 = vsel %vm396_vm0, %v2939_v2, 0  ;;  %v2945_v8 = vld [vmem:[%s3631_s1 + $0x10] sm:$0x3f]   ;;  %v3359_v15 = vshrl.u32 %v740_v14, 7 }
  0x3d   : > { %s314_s23 = scalar_select %p313_p8, %s3129_s27, 3  ;;  %2668 = vmatpush3.bf16.msra.mxu0 %v398_v1  ;;  %v595_v12 = vsel %vm396_vm0, %v2945_v8, 0  ;;  %v3366_v18 = vld [vmem:[%s3632_s2] ss:$0 sm:$0xff]  ;;  %vm909_vm2 = vcmask 1040384   ;;  %vm946_vm4 = vcmask 1046528  }
  0x3e   : > { %s2332_s9 = sshll.u32 %s312_s19, 6  ;;  %2846 = vmatprep.subr.msk.bf16.mxu0 %vm396_vm0, %v2939_v2  ;;  %v743_v16 = vadd.s32 16, %v3359_v15  ;;  %v742_v17 = vadd.s32 8, %v3359_v15  ;;  %v757_v19 = vand.u32 15, %v3359_v15  ;;  %v3372_v22 = vld [vmem:[%s3633_s3] ss:$0 sm:$0xff] }
  0x3f   : > { %s2331_s13 = sshll.u32 %s314_s23, 4  ;;  %v744_v24 = vadd.s32 24, %v3359_v15  ;;  %v745_v27 = vadd.s32 32, %v3359_v15  ;;  %v3378_v28 = vadd.s32 40, %v3359_v15  ;;  %v747_v32 = vadd.s32 48, %v3359_v15  ;;  %p2369_p10 = scmp.ne.s32.totalorder %s3129_s27, 0 }
  0x40   : > { %s317_s12 = sadd.s32 %s2332_s9, %s2331_s13  ;;  %v771_v20 = vand.u32 15, %v743_v16  ;;  %v764_v23 = vand.u32 15, %v742_v17  ;;  %vm3381_vm3 = vcmp.gt.s32.totalorder %v757_v19, 0  ;;  %v3402_v48 = vadd.s32 56, %v3359_v15 }
  0x41   : > { %s2333_s14 = sshll.u32 %s317_s12, 2  ;;  %v778_v40 = vand.u32 15, %v744_v24  ;;  %v785_v43 = vand.u32 15, %v745_v27  ;;  %v792_v44 = vand.u32 15, %v3378_v28  ;;  %v799_v47 = vand.u32 15, %v747_v32 }
  0x42   : > { %s3321_s11 = scalar_lea.vmem %s3630_s0, %s2333_s14  ;;  %vm3388_vm5 = vcmp.gt.s32.totalorder %v771_v20, 0  ;;  %vm3394_vm6 = vcmp.lt.s32.totalorder %v764_v23, 15  ;;  %v3407_v51 = vadd.s32 64, %v3359_v15  ;;  %v3410_v52 = vadd.s32 88, %v3359_v15  ;;  %s3537_s14 = scalar_lea.vmem [#allocation6], %s3308_s10 }
  0x43   : > { %v2937_v3 = vld [vmem:[%s3321_s11 + $0x8] sm:$0xff]   ;;  %v2938_v4 = vld [vmem:[%s3321_s11 + $0x10] sm:$0xff]   ;;  %v2940_v6 = vld [vmem:[%s3321_s11 + $0x18] sm:$0xff]   ;;  %vm3432_vm7 = vcmp.gt.s32.totalorder %v785_v43, 0  ;;  %vm3436_vm8 = vcmp.lt.s32.totalorder %v778_v40, 15  ;;  %vm3447_vm9 = vcmp.gt.s32.totalorder %v799_v47, 0 }
  0x44   : > { %2669 = vmatprep.mubr.msk.bf16.mxu0 %vm377_vm1, %v2937_v3  ;;  %v2941_v7 = vld [vmem:[%s3321_s11 + $0x20] sm:$0xff]   ;;  %v2942_v9 = vld [vmem:[%s3321_s11 + $0x28] sm:$0xff]   ;;  %v2943_v10 = vld [vmem:[%s3321_s11 + $0x30] sm:$0xff]   ;;  %vm3451_vm10 = vcmp.lt.s32.totalorder %v792_v44, 15  ;;  %v751_v39 = vadd.s32 80, %v3359_v15 }
  0x45   : > { %2670 = vmatmul.mubr.msk.bf16.vlgmr.msra.gmra.mrb[0].mxu0 %vm377_vm1, %v2938_v4  ;;  %v2944_v11 = vld [vmem:[%s3321_s11] sm:$0xff]   ;;  %v2946_v13 = vld [vmem:[%s3321_s11 + $0x38] sm:$0xff]  }
  0x46   : > { %2682 = vmatpush3.bf16.msra.mxu0 %v495_v5  ;;  %2673 = vmatprep.mubr.msk.bf16.mxu0 %vm377_vm1, %v2940_v6 }
  0x47   : > { %2847 = vmatprep.subr.msk.bf16.mxu0 %vm396_vm0, %v2945_v8 }
  0x4d   : > { %2674 = vmatmul.mubr.msk.bf16.gmra.mrb[4].mxu0 %vm377_vm1, %v2941_v7 }
  0x4e   : > { %2677 = vmatprep.mubr.msk.bf16.mxu0 %vm377_vm1, %v2942_v9 }
  0x55   : > { %2678 = vmatmul.mubr.msk.bf16.gmra.mrb[8].mxu0 %vm377_vm1, %v2943_v10 }
  0x56   : > { %2683 = vmatprep.mubr.msk.bf16.mxu0 %vm377_vm1, %v2944_v11 }
  0x5d   : > { %2684 = vmatmul.mubr.msk.bf16.vlgmr.msra.gmra.mrb[0].mxu0 %vm377_vm1, %v2937_v3 }
  0x5e   : > { %2696 = vmatpush3.bf16.msra.mxu0 %v595_v12  ;;  %2687 = vmatprep.mubr.msk.bf16.mxu0 %vm377_vm1, %v2938_v4 }
  0x65   : > { %2688 = vmatmul.mubr.msk.bf16.gmra.mrb[4].mxu0 %vm377_vm1, %v2940_v6 }
  0x66   : > { %2691 = vmatprep.mubr.msk.bf16.mxu0 %vm377_vm1, %v2941_v7 }
  0x6d   : > { %2692 = vmatmul.mubr.msk.bf16.gmra.mrb[8].mxu0 %vm377_vm1, %v2942_v9 }
  0x6e   : > { %2697 = vmatprep.mubr.msk.bf16.mxu0 %vm377_vm1, %v2938_v4 }
  0x75   : > { %2698 = vmatmul.mubr.msk.bf16.vlgmr.msra.gmra.mrb[0].mxu0 %vm377_vm1, %v2940_v6 }
  0x76   : > { %2701 = vmatprep.mubr.msk.bf16.mxu0 %vm377_vm1, %v2941_v7 }
  0x7d   : > { %2702 = vmatmul.mubr.msk.bf16.gmra.mrb[4].mxu0 %vm377_vm1, %v2942_v9 }
  0x7e   : > { %2705 = vmatprep.mubr.msk.bf16.mxu0 %vm377_vm1, %v2943_v10 }
  0x85   : > { %2706 = vmatmul.mubr.msk.bf16.gmra.mrb[8].mxu0 %vm377_vm1, %v2946_v13 }
 0x148   : > { %v2699_v21 = vpop.f32.mrb[0].mxu0 }
 0x149   : > { %v699_v25 = vmul.f32 %v2699_v21, %v3366_v18  ;;  %v631_v26 = vpop.f32.mrb[1].mxu0 }
 0x14a   : > { %v697_v29 = vmul.f32 %v3366_v18, %v631_v26  ;;  %v2700_v31 = vpop.f32.mrb[2].mxu0 }
 0x14b   : > { %v718_v33 = vadd.f32 %v3372_v22, %v699_v25  ;;  %v700_v34 = vmul.f32 %v2700_v31, %v3366_v18  ;;  %v634_v35 = vpop.f32.mrb[3].mxu0 }
 0x14c   : > { %v716_v37 = vadd.f32 %v3372_v22, %v697_v29  ;;  %v698_v38 = vmul.f32 %v3366_v18, %v634_v35  ;;  %v806_v29 = vand.u32 15, %v3402_v48 }
 0x14d   : > { %v730_v41 = vmax.f32 %v718_v33, 0.0  ;;  %v719_v42 = vadd.f32 %v3372_v22, %v700_v34  ;;  %v813_v33 = vand.u32 15, %v3407_v51  ;;  %v834_v34 = vand.u32 15, %v3410_v52 }
 0x14e   : > { %v728_v45 = vmax.f32 %v716_v37, 0.0  ;;  %v717_v46 = vadd.f32 %v3372_v22, %v698_v38  ;;  %v3463_v38 = vadd.s32 72, %v3359_v15  ;;  %vm3501_vm12 = vcmp.lt.s32.totalorder %v806_v29, 15 }
 0x14f   : > { %v913_v49 = vrot.slane %v730_v41, 7  ;;  %v3404_v50 = vmax.f32 %v719_v42, 0.0  ;;  %v950_v53 = vrot.slane %v730_v41, 1  ;;  %vm3494_vm11 = vcmp.gt.s32.totalorder %v813_v33, 0 }
 0x150   : > { %v910_v54 = vrot.slane %v728_v45, 7  ;;  %v947_v55 = vrot.slane %v728_v45, 1  ;;  %v729_v56 = vmax.f32 %v717_v46, 0.0  ;;  %v2703_v57 = vpop.f32.mrb[4].mxu0  ;;  %v820_v14 = vand.u32 15, %v3463_v38 }
 0x151   : > { %v915_v58 = vrot.slane %v3404_v50, 7  ;;  %v952_v59 = vrot.slane %v3404_v50, 1  ;;  %v1083_v60 = vpack.c.bf16 %v3404_v50, %v730_v41  ;;  %v703_v61 = vmul.f32 %v2703_v57, %v3366_v18  ;;  %v647_v62 = vpop.f32.mrb[5].mxu0 }
 0x152   : > { %v945_v63 = vsel %vm909_vm2, 0.0, %v910_v54  ;;  %v911_v0 = vrot.slane %v729_v56, 7  ;;  %v948_v1 = vrot.slane %v729_v56, 1  ;;  %v1080_v2 = vpack.c.bf16 %v729_v56, %v728_v45  ;;  %v2704_v3 = vpop.f32.mrb[6].mxu0 }
 0x153   : > { %v1019_v4 = vsel %vm3381_vm3, %v945_v63, 0.0  ;;  %v916_v5 = vsel %vm909_vm2, %v913_v49, %v915_v58  ;;  %v3425_v6 = vsel %vm946_vm4, %v950_v53, %v952_v59  ;;  %1101 = vst [vmem:[#allocation2 + $0x20] sm:$0xff] %v1083_v60  ;;  %v722_v7 = vadd.f32 %v3372_v22, %v703_v61  ;;  %v650_v8 = vpop.f32.mrb[7].mxu0 }
 0x154   : > { %v912_v9 = vsel %vm909_vm2, %v910_v54, %v911_v0  ;;  %v914_v10 = vsel %vm909_vm2, %v911_v0, %v913_v49  ;;  %v949_v11 = vsel %vm946_vm4, %v947_v55, %v948_v1  ;;  %v951_v12 = vsel %vm946_vm4, %v948_v1, %v950_v53  ;;  %1098 = vst [vmem:[#allocation2 + $0x8] sm:$0xff] %v1080_v2 }
 0x155   : > { %v1021_v16 = vsel %vm3388_vm5, %v914_v10, 0.0  ;;  %v1068_v17 = vsel %vm3394_vm6, %v951_v12, 0.0  ;;  %v1079_v19 = vpack.c.bf16 %v912_v9, %v1019_v4  ;;  %v734_v20 = vmax.f32 %v722_v7, 0.0 }
 0x156   : > { %v1081_v21 = vpack.c.bf16 %v1068_v17, %v949_v11  ;;  %v1082_v23 = vpack.c.bf16 %v916_v5, %v1021_v16  ;;  %v701_v24 = vmul.f32 %v3366_v18, %v647_v62  ;;  %v704_v25 = vmul.f32 %v2704_v3, %v3366_v18 }
 0x157   : > { %1097 = vst [vmem:[#allocation2] sm:$0xff] %v1079_v19  ;;  %v702_v26 = vmul.f32 %v3366_v18, %v650_v8  ;;  %v921_v40 = vrot.slane %v734_v20, 7  ;;  %v958_v41 = vrot.slane %v734_v20, 1  ;;  %v827_v16 = vand.u32 15, %v751_v39 }
 0x158   : > { %1099 = vst [vmem:[#allocation2 + $0x10] sm:$0xff] %v1081_v21  ;;  %1100 = vst [vmem:[#allocation2 + $0x18] sm:$0xff] %v1082_v23  ;;  %v720_v30 = vadd.f32 %v3372_v22, %v701_v24  ;;  %v723_v31 = vadd.f32 %v3372_v22, %v704_v25  ;;  %v2707_v32 = vpop.f32.mrb[8].mxu0  ;;  %vm3505_vm13 = vcmp.lt.s32.totalorder %v834_v34, 15  ;;  %vm3513_vm15 = vcmp.lt.s32.totalorder %v820_v14, 15 }
 0x159   : > { %v721_v35 = vadd.f32 %v3372_v22, %v702_v26  ;;  %v707_v36 = vmul.f32 %v2707_v32, %v3366_v18  ;;  %v663_v37 = vpop.f32.mrb[9].mxu0  ;;  %vm3509_vm14 = vcmp.gt.s32.totalorder %v827_v16, 0 }
 0x15a   : > { %v732_v42 = vmax.f32 %v720_v30, 0.0  ;;  %v735_v43 = vmax.f32 %v723_v31, 0.0  ;;  %v2708_v44 = vpop.f32.mrb[10].mxu0  ;;  %v705_v47 = vmul.f32 %v3366_v18, %v663_v37 }
 0x15b   : > { %v733_v45 = vmax.f32 %v721_v35, 0.0  ;;  %v726_v46 = vadd.f32 %v3372_v22, %v707_v36  ;;  %v708_v49 = vmul.f32 %v2708_v44, %v3366_v18  ;;  %v666_v51 = vpop.f32.mrb[11].mxu0 }
 0x15c   : > { %v917_v52 = vrot.slane %v732_v42, 7  ;;  %v954_v53 = vrot.slane %v732_v42, 1  ;;  %v923_v54 = vrot.slane %v735_v43, 7  ;;  %v960_v55 = vrot.slane %v735_v43, 1 }
 0x15d   : > { %v1089_v56 = vpack.c.bf16 %v735_v43, %v734_v20  ;;  %v919_v57 = vrot.slane %v733_v45, 7  ;;  %v956_v15 = vrot.slane %v733_v45, 1  ;;  %v1086_v60 = vpack.c.bf16 %v733_v45, %v732_v42 }
 0x15e   : > { %v918_v61 = vsel %vm909_vm2, %v915_v58, %v917_v52  ;;  %v955_v62 = vsel %vm946_vm4, %v952_v59, %v954_v53  ;;  %v924_v63 = vsel %vm909_vm2, %v921_v40, %v923_v54  ;;  %v961_v0 = vsel %vm946_vm4, %v958_v41, %v960_v55 }
 0x15f   : > { %v1023_v1 = vsel %vm3432_vm7, %v918_v61, 0.0  ;;  %v1070_v2 = vsel %vm3436_vm8, %v955_v62, 0.0  ;;  %1107 = vst [vmem:[#allocation2 + $0x50] sm:$0xff] %v1089_v56  ;;  %v920_v3 = vsel %vm909_vm2, %v917_v52, %v919_v57  ;;  %v922_v4 = vsel %vm909_vm2, %v919_v57, %v921_v40  ;;  %1104 = vst [vmem:[#allocation2 + $0x38] sm:$0xff] %v1086_v60 }
 0x160   : > { %v1084_v50 = vpack.c.bf16 %v1070_v2, %v3425_v6  ;;  %v957_v58 = vsel %vm946_vm4, %v954_v53, %v956_v15  ;;  %v959_v59 = vsel %vm946_vm4, %v956_v15, %v958_v41  ;;  %v1025_v5 = vsel %vm3447_vm9, %v922_v4, 0.0 }
 0x161   : > { %v1072_v7 = vsel %vm3451_vm10, %v959_v59, 0.0  ;;  %v1085_v8 = vpack.c.bf16 %v920_v3, %v1023_v1  ;;  %v1088_v9 = vpack.c.bf16 %v924_v63, %v1025_v5  ;;  %v738_v10 = vmax.f32 %v726_v46, 0.0 }
 0x162   : > { %1102 = vst [vmem:[#allocation2 + $0x28] sm:$0xff] %v1084_v50  ;;  %v1087_v11 = vpack.c.bf16 %v1072_v7, %v957_v58  ;;  %v724_v12 = vadd.f32 %v3372_v22, %v705_v47  ;;  %v727_v13 = vadd.f32 %v3372_v22, %v708_v49  ;;  %v706_v6 = vmul.f32 %v3366_v18, %v666_v51 }
 0x163   : > { %1103 = vst [vmem:[#allocation2 + $0x30] sm:$0xff] %v1085_v8  ;;  %1106 = vst [vmem:[#allocation2 + $0x48] sm:$0xff] %v1088_v9  ;;  %v929_v23 = vrot.slane %v738_v10, 7  ;;  %v966_v24 = vrot.slane %v738_v10, 1  ;;  %v3150_v56 = vmov (!%p2369_p10), 0  }
 0x164   : > { %1105 = vst [vmem:[#allocation2 + $0x40] sm:$0xff] %v1087_v11  ;;  %v736_v17 = vmax.f32 %v724_v12, 0.0  ;;  %v739_v20 = vmax.f32 %v727_v13, 0.0  ;;  %v725_v21 = vadd.f32 %v3372_v22, %v706_v6  ;;  %1119 = vst [vmem:[#allocation2] sm:$0xff] (!%p2369_p10), %v3150_v56 }
 0x165   : > { %1120 = vst [vmem:[#allocation2 + $0x8] sm:$0xff] (!%p2369_p10), %v3150_v56  ;;  %1121 = vst [vmem:[#allocation2 + $0x10] sm:$0xff] (!%p2369_p10), %v3150_v56 }
 0x166   : > { %v925_v26 = vrot.slane %v736_v17, 7  ;;  %v962_v27 = vrot.slane %v736_v17, 1  ;;  %v931_v28 = vrot.slane %v739_v20, 7  ;;  %v968_v30 = vrot.slane %v739_v20, 1 }
 0x167   : > { %v1095_v31 = vpack.c.bf16 %v739_v20, %v738_v10  ;;  %v737_v32 = vmax.f32 %v725_v21, 0.0 }
 0x168   : > { %v926_v29 = vsel %vm909_vm2, %v923_v54, %v925_v26  ;;  %v963_v33 = vsel %vm946_vm4, %v960_v55, %v962_v27  ;;  %v932_v34 = vsel %vm909_vm2, %v929_v23, %v931_v28  ;;  %v969_v35 = vsel %vm946_vm4, %v966_v24, %v968_v30 }
 0x169   : > { %v1027_v36 = vsel %vm3494_vm11, %v926_v29, 0.0  ;;  %v1074_v37 = vsel %vm3501_vm12, %v963_v33, 0.0  ;;  %v982_v38 = vsel %vm946_vm4, %v968_v30, 0.0  ;;  %1113 = vst [vmem:[#allocation2 + $0x80] sm:$0xff] %v1095_v31  ;;  %v927_v39 = vrot.slane %v737_v32, 7 }
 0x16a   : > { %v1090_v40 = vpack.c.bf16 %v1074_v37, %v961_v0  ;;  %v1078_v41 = vsel %vm3505_vm13, %v982_v38, 0.0  ;;  %v964_v42 = vrot.slane %v737_v32, 1  ;;  %v1092_v43 = vpack.c.bf16 %v737_v32, %v736_v17  ;;  %1118 = sbr.rel (%p2369_p10) target bundleno = 369 (0x171), region = 56 }
 0x16b   : > { %v1096_v44 = vpack.c.bf16 %v1078_v41, %v969_v35  ;;  %v928_v45 = vsel %vm909_vm2, %v925_v26, %v927_v39  ;;  %v930_v46 = vsel %vm909_vm2, %v927_v39, %v929_v23 }
 0x16c   : > { %1108 = vst [vmem:[#allocation2 + $0x58] sm:$0xff] %v1090_v40  ;;  %v965_v47 = vsel %vm946_vm4, %v962_v27, %v964_v42  ;;  %v967_v49 = vsel %vm946_vm4, %v964_v42, %v966_v24  ;;  %v1029_v51 = vsel %vm3509_vm14, %v930_v46, 0.0  ;;  %v1091_v52 = vpack.c.bf16 %v928_v45, %v1027_v36  ;;  %1110 = vst [vmem:[#allocation2 + $0x68] sm:$0xff] %v1092_v43 }
 0x16d   : > { %1114 = vst [vmem:[#allocation2 + $0x88] sm:$0xff] %v1096_v44  ;;  %v1076_v53 = vsel %vm3513_vm15, %v967_v49, 0.0  ;;  %v1094_v54 = vpack.c.bf16 %v932_v34, %v1029_v51 }
 0x16e   : > { %v1093_v55 = vpack.c.bf16 %v1076_v53, %v965_v47  ;;  %1109 = vst [vmem:[#allocation2 + $0x60] sm:$0xff] %v1091_v52 }
 0x16f   : > { %1112 = vst [vmem:[#allocation2 + $0x78] sm:$0xff] %v1094_v54 }
 0x170   : > { %1111 = vst [vmem:[#allocation2 + $0x70] sm:$0xff] %v1093_v55 }
 0x171 PF: > { %p2370_p12 = scmp.ne.s32.totalorder %s3129_s27, 3 }
 0x172   : > { %v3151_v57 = vmov (!%p2370_p12), 0  }
 0x173   : > { %1125 = sbr.rel (%p2370_p12) target bundleno = 378 (0x17a), region = 60  ;;  %1126 = vst [vmem:[#allocation2 + $0x78] sm:$0xff] (!%p2370_p12), %v3151_v57  ;;  %1127 = vst [vmem:[#allocation2 + $0x80] sm:$0xff] (!%p2370_p12), %v3151_v57 }
 0x174   : > { %1128 = vst [vmem:[#allocation2 + $0x88] sm:$0xff] (!%p2370_p12), %v3151_v57 }
 0x17a PF: > { %v2947_v15 = vld [vmem:[#allocation3 + $0x100] sm:$0xff]   ;;  %v2951_v63 = vld [vmem:[#allocation3 + $0x108] sm:$0xff]   ;;  %v2955_v3 = vld [vmem:[#allocation3 + $0x110] sm:$0xff]   ;;  %s2454_s23 = sshll.u32 %s3129_s27, 3  ;;  %s2455_s9 = sshll.u32 %s3133_s28, 5 }
 0x17b   : > { %v2948_v60 = vld [vmem:[#allocation3 + $0x40] sm:$0xff]   ;;  %2511 = vmatprep.subr.bf16.mxu1 %v2947_v15  ;;  %v2952_v0 = vld [vmem:[#allocation3 + $0x48] sm:$0xff]   ;;  %v2956_v4 = vld [vmem:[#allocation3 + $0x50] sm:$0xff]   ;;  %s2223_s13 = sadd.s32 %s2455_s9, %s2454_s23  ;;  %s2226_s28 = sshll.u32 %s3537_s14, 4  ;;  %s3572_s28 = int_to_ptr.vmem [resolvable:$true] %s2226_s28 }
 0x17c   : > { %v2949_v61 = vld [vmem:[#allocation3 + $0xc0] sm:$0xff]   ;;  %2563 = vmatprep.subr.bf16.mxu0 %v2948_v60  ;;  %v2953_v1 = vld [vmem:[#allocation3 + $0xc8] sm:$0xff]   ;;  %v2957_v50 = vld [vmem:[#allocation3 + $0xd0] sm:$0xff]   ;;  %s2456_s27 = sshll.u32 %s2223_s13, 6  ;;  %s3678_s11 = sand.u32 1, %s3121_s25  }
 0x17d   : > { %v2950_v62 = vld [vmem:[#allocation3] sm:$0xff]   ;;  %2512 = vmatpush3.bf16.msra.mxu1 %v2949_v61  ;;  %v2954_v2 = vld [vmem:[#allocation3 + $0x8] sm:$0xff]   ;;  %v2958_v58 = vld [vmem:[#allocation3 + $0x10] sm:$0xff]   ;;  %s3570_s12 = scalar_lea.hbm %s3637_s7, %s2456_s27  ;;  %s3578_s10 = scalar_lea.sflag [#allocation5], %s3678_s11 }
 0x17e   : > { %2564 = vmatpush3.bf16.msra.mxu0 %v2950_v62  ;;  %2513 = vmatprep.subr.bf16.mxu1 %v2951_v63  ;;  %v2959_v59 = vld [vmem:[#allocation3 + $0x118] sm:$0xff]   ;;  %v2963_v9 = vld [vmem:[#allocation3 + $0x120] sm:$0xff]   ;;  %v2967_v13 = vld [vmem:[#allocation3 + $0x128] sm:$0xff]   ;;  %s3047_s17 = scalar_lea.vmem %s3572_s28, 512  ;;  %p3679_p2 = scmp.ne.s32.totalorder %s3646_s15, 0 }
 0x17f   : > { %2565 = vmatprep.subr.bf16.mxu0 %v2952_v0  ;;  %v2960_v5 = vld [vmem:[#allocation3 + $0x58] sm:$0xff]   ;;  %v2964_v10 = vld [vmem:[#allocation3 + $0x60] sm:$0xff]   ;;  %v2968_v6 = vld [vmem:[#allocation3 + $0x68] sm:$0xff]   ;;  %p3048_p0 = scmp.ne.s32.totalorder %s3572_s28, %s3047_s17  ;;  %s3152_s18 = smov [#allocation6]  }
 0x180   : > { %v2961_v7 = vld [vmem:[#allocation3 + $0xd8] sm:$0xff]   ;;  %v2965_v11 = vld [vmem:[#allocation3 + $0xe0] sm:$0xff]   ;;  %v2969_v14 = vld [vmem:[#allocation3 + $0xe8] sm:$0xff]   ;;  %s3051_s19 = sshll.u32 %s3152_s18, 4  ;;  %s3052_s19 = int_to_ptr.vmem [resolvable:$false] %s3051_s19 }
 0x181   : > { %2514 = vmatpush3.bf16.msra.mxu1 %v2953_v1  ;;  %v2962_v8 = vld [vmem:[#allocation3 + $0x18] sm:$0xff]   ;;  %v2966_v12 = vld [vmem:[#allocation3 + $0x20] sm:$0xff]   ;;  %v2970_v16 = vld [vmem:[#allocation3 + $0x28] sm:$0xff]   ;;  %p3049_p5 = pnand %p3048_p0, %p3679_p2  ;;  %s3053_s23 = scalar_lea.vmem %s3052_s19, 1024 }
 0x182   : > { %2566 = vmatpush3.bf16.msra.mxu0 %v2954_v2  ;;  %2515 = vmatprep.subr.bf16.mxu1 %v2955_v3  ;;  %v2971_v17 = vld [vmem:[#allocation3 + $0x130] sm:$0xff]   ;;  %v2975_v23 = vld [vmem:[#allocation3 + $0x138] sm:$0xff]   ;;  %v1132_v28 = vld [vmem:[#allocation2 + $0x18] sm:$0xff]  ;;  %p3054_p7 = scmp.lt.s32.totalorder %s3572_s28, %s3052_s19  ;;  %p3055_p9 = scmp.lt.s32.totalorder %s3053_s23, %s3047_s17 }
 0x183   : > { %2567 = vmatprep.subr.bf16.mxu0 %v2956_v4  ;;  %v2972_v19 = vld [vmem:[#allocation3 + $0x70] sm:$0xff]   ;;  %v2976_v24 = vld [vmem:[#allocation3 + $0x78] sm:$0xff]   ;;  %v2979_v30 = vld [vmem:[#allocation3 + $0x140] sm:$0xff]   ;;  %p3050_p6 = pneg %p3049_p5 }
 0x184   : > { %v2973_v20 = vld [vmem:[#allocation3 + $0xf0] sm:$0xff]   ;;  %v2977_v18 = vld [vmem:[#allocation3 + $0xf8] sm:$0xff]   ;;  %v2980_v32 = vld [vmem:[#allocation3 + $0x1c0] sm:$0xff]   ;;  %p3056_p11 = por %p3055_p9, %p3054_p7 }
 0x185   : > { %2516 = vmatpush3.bf16.msra.mxu1 %v2957_v50  ;;  %v2974_v21 = vld [vmem:[#allocation3 + $0x30] sm:$0xff]   ;;  %v2978_v25 = vld [vmem:[#allocation3 + $0x38] sm:$0xff]   ;;  %v2981_v22 = vld [vmem:[#allocation3 + $0x180] sm:$0xff]  }
 0x186   : > { %2568 = vmatpush3.bf16.msra.mxu0 %v2958_v58  ;;  %2517 = vmatprep.subr.bf16.mxu1 %v2959_v59  ;;  %v1133_v26 = vld [vmem:[#allocation2 + $0x20] sm:$0xff]  ;;  %v1130_v27 = vld [vmem:[#allocation2 + $0x8] sm:$0xff]  ;;  %v2982_v48 = vld [vmem:[#allocation3 + $0x148] sm:$0xff]   ;;  %p3057_p13 = pnand %p3056_p11, %p3050_p6 }
 0x187   : > { %2569 = vmatprep.subr.bf16.mxu0 %v2960_v5  ;;  %1417 = vmatprep.mubr.bf16.mxu1 %v1133_v26  ;;  %v1129_v31 = vld [vmem:[#allocation2] sm:$0xff]  ;;  %v2983_v29 = vld [vmem:[#allocation3 + $0x1c8] sm:$0xff]   ;;  %v3541_v35 = vld [vmem:[#allocation2 + $0x30] sm:$0xff] }
 0x188   : > { %1691 = vmatprep.mubr.bf16.mxu0 %v1130_v27  ;;  %v2984_v33 = vld [vmem:[#allocation3 + $0x188] sm:$0xff]   ;;  %v2985_v36 = vld [vmem:[#allocation3 + $0x150] sm:$0xff]   ;;  %v2988_v39 = vld [vmem:[#allocation3 + $0x158] sm:$0xff]  }
 0x189   : > { %2518 = vmatpush3.bf16.msra.mxu1 %v2961_v7  ;;  %v1136_v34 = vld [vmem:[#allocation2 + $0x38] sm:$0xff]  ;;  %v2986_v37 = vld [vmem:[#allocation3 + $0x1d0] sm:$0xff]   ;;  %v2989_v40 = vld [vmem:[#allocation3 + $0x1d8] sm:$0xff]  }
 0x18a   : > { %2570 = vmatpush3.bf16.msra.mxu0 %v2962_v8  ;;  %2519 = vmatprep.subr.bf16.mxu1 %v2963_v9  ;;  %v2987_v38 = vld [vmem:[#allocation3 + $0x190] sm:$0xff]   ;;  %v2990_v41 = vld [vmem:[#allocation3 + $0x198] sm:$0xff]   ;;  %v1139_v42 = vld [vmem:[#allocation2 + $0x50] sm:$0xff] }
 0x18b   : > { %2571 = vmatprep.subr.bf16.mxu0 %v2964_v10  ;;  %v3544_v43 = vld [vmem:[#allocation2 + $0x48] sm:$0xff]  ;;  %v2991_v44 = vld [vmem:[#allocation3 + $0x160] sm:$0xff]   ;;  %v2994_v47 = vld [vmem:[#allocation3 + $0x168] sm:$0xff]  }
 0x18c   : > { %v2992_v45 = vld [vmem:[#allocation3 + $0x1e0] sm:$0xff]   ;;  %v2995_v49 = vld [vmem:[#allocation3 + $0x1e8] sm:$0xff]   ;;  %v1190_v51 = vld [vmem:[#allocation2 + $0x68] sm:$0xff] }
 0x18d   : > { %2520 = vmatpush3.bf16.msra.mxu1 %v2965_v11  ;;  %v2993_v46 = vld [vmem:[#allocation3 + $0x1a0] sm:$0xff]   ;;  %v2996_v52 = vld [vmem:[#allocation3 + $0x1a8] sm:$0xff]   ;;  %v2997_v53 = vld [vmem:[#allocation3 + $0x170] sm:$0xff]  }
 0x18e   : > { %2572 = vmatpush3.bf16.msra.mxu0 %v2966_v12  ;;  %2521 = vmatprep.subr.bf16.mxu1 %v2967_v13  ;;  %v2998_v54 = vld [vmem:[#allocation3 + $0x1f0] sm:$0xff]   ;;  %v3000_v56 = vld [vmem:[#allocation3 + $0x178] sm:$0xff]   ;;  %v3003_v61 = vld [vmem:[#allocation3 + $0x80] sm:$0xff]  }
 0x18f   : > { %2573 = vmatprep.subr.bf16.mxu0 %v2968_v6  ;;  %v1189_v55 = vld [vmem:[#allocation2 + $0x60] sm:$0xff]  ;;  %v3001_v15 = vld [vmem:[#allocation3 + $0x1f8] sm:$0xff]   ;;  %v3004_v0 = vld [vmem:[#allocation3 + $0x88] sm:$0xff]  }
 0x190   : > { %v2999_v57 = vld [vmem:[#allocation3 + $0x1b0] sm:$0xff]   ;;  %v1134_v60 = vld [vmem:[#allocation2 + $0x28] sm:$0xff]  ;;  %v3549_v1 = vld [vmem:[#allocation2 + $0x58] sm:$0xff] }
 0x191   : > { %2522 = vmatpush3.bf16.msra.mxu1 %v2969_v14  ;;  %v3002_v62 = vld [vmem:[#allocation3 + $0x1b8] sm:$0xff]   ;;  %v1137_v63 = vld [vmem:[#allocation2 + $0x40] sm:$0xff]  ;;  %v1191_v4 = vld [vmem:[#allocation2 + $0x70] sm:$0xff] }
 0x192   : > { %2574 = vmatpush3.bf16.msra.mxu0 %v2970_v16  ;;  %2523 = vmatprep.subr.bf16.mxu1 %v2971_v17  ;;  %v3005_v2 = vld [vmem:[#allocation3 + $0x90] sm:$0xff]   ;;  %v3006_v3 = vld [vmem:[#allocation3 + $0x98] sm:$0xff]   ;;  %v1131_v50 = vld [vmem:[#allocation2 + $0x10] sm:$0xff] }
 0x193   : > { %2575 = vmatprep.subr.bf16.mxu0 %v2972_v19  ;;  %v3007_v58 = vld [vmem:[#allocation3 + $0xa0] sm:$0xff]   ;;  %v3008_v59 = vld [vmem:[#allocation3 + $0xa8] sm:$0xff]   ;;  %v1799_v5 = vld [vmem:[#allocation2 + $0x80] sm:$0xff] }
 0x194   : > { %v3009_v7 = vld [vmem:[#allocation3 + $0xb0] sm:$0xff]   ;;  %v3010_v8 = vld [vmem:[#allocation3 + $0xb8] sm:$0xff]   ;;  %v1798_v9 = vld [vmem:[#allocation2 + $0x78] sm:$0xff] }
 0x195   : > { %2524 = vmatpush3.bf16.msra.mxu1 %v2973_v20  ;;  %v3011_v10 = vld [vmem:[#allocation3 + $0x200] sm:$0xff]   ;;  %v3012_v11 = vld [vmem:[#allocation3 + $0x208] sm:$0xff]   ;;  %v3013_v12 = vld [vmem:[#allocation3 + $0x210] sm:$0xff]  }
 0x196   : > { %2576 = vmatpush3.bf16.msra.mxu0 %v2974_v21  ;;  %2525 = vmatprep.subr.bf16.mxu1 %v2975_v23  ;;  %v3014_v13 = vld [vmem:[#allocation3 + $0x218] sm:$0xff]   ;;  %v3015_v6 = vld [vmem:[#allocation3 + $0x220] sm:$0xff]   ;;  %v3016_v14 = vld [vmem:[#allocation3 + $0x228] sm:$0xff]  }
 0x197   : > { %2577 = vmatprep.subr.bf16.mxu0 %v2976_v24  ;;  %v3017_v16 = vld [vmem:[#allocation3 + $0x230] sm:$0xff]   ;;  %v3018_v17 = vld [vmem:[#allocation3 + $0x238] sm:$0xff]  }
 0x198   : > { %v1800_v19 = vld [vmem:[#allocation2 + $0x88] sm:$0xff] }
 0x199   : > { %2526 = vmatpush3.bf16.msra.mxu1 %v2977_v18 }
 0x19a   : > { %2578 = vmatpush3.bf16.msra.mxu0 %v2978_v25  ;;  %2709 = vmatprep.subr.bf16.mxu1 %v2979_v30 }
 0x19b   : > { %2615 = vmatprep.subr.bf16.mxu0 %v2980_v32 }
 0x19c   : > { %1418 = vmatmul.mubr.bf16.vlgmr.msra.gmra.mrb[0].mxu1 %v1132_v28 }
 0x19d   : > { %1692 = vmatmul.mubr.bf16.vlgmr.msra.gmra.mrb[12].mxu0 %v1129_v31  ;;  %2710 = vmatpush3.bf16.msra.mxu1 %v2979_v30 }
 0x19e   : > { %1699 = vmatprep.mubr.bf16.mxu0 %v1133_v26  ;;  %2616 = vmatpush3.bf16.msra.mxu0 %v2981_v22 }
 0x19f   : > { %2711 = vmatprep.subr.bf16.mxu1 %v2982_v48  ;;  %2617 = vmatprep.subr.bf16.mxu0 %v2983_v29 }
 0x1a0   : > { %1425 = vmatprep.mubr.bf16.mxu1 %v1136_v34 }
 0x1a1   : > { %2712 = vmatpush3.bf16.msra.mxu1 %v2982_v48 }
 0x1a2   : > { %2618 = vmatpush3.bf16.msra.mxu0 %v2984_v33  ;;  %2713 = vmatprep.subr.bf16.mxu1 %v2985_v36 }
 0x1a3   : > { %2619 = vmatprep.subr.bf16.mxu0 %v2986_v37 }
 0x1a4   : > { %1426 = vmatmul.mubr.bf16.gmra.mrb[4].mxu1 %v3541_v35 }
 0x1a5   : > { %1700 = vmatmul.mubr.bf16.gmra.mrb[16].mxu0 %v1132_v28  ;;  %2714 = vmatpush3.bf16.msra.mxu1 %v2985_v36 }
 0x1a6   : > { %2715 = vmatprep.subr.bf16.mxu1 %v2988_v39  ;;  %1707 = vmatprep.mubr.bf16.mxu0 %v1136_v34 }
 0x1a7   : > { %2620 = vmatpush3.bf16.msra.mxu0 %v2987_v38  ;;  %1433 = vmatprep.mubr.bf16.mxu1 %v1139_v42 }
 0x1a8   : > { %2621 = vmatprep.subr.bf16.mxu0 %v2989_v40 }
 0x1a9   : > { %2716 = vmatpush3.bf16.msra.mxu1 %v2988_v39 }
 0x1aa   : > { %2717 = vmatprep.subr.bf16.mxu1 %v2991_v44 }
 0x1ab   : > { %2622 = vmatpush3.bf16.msra.mxu0 %v2990_v41 }
 0x1ac   : > { %1434 = vmatmul.mubr.bf16.gmra.mrb[8].mxu1 %v3544_v43  ;;  %2623 = vmatprep.subr.bf16.mxu0 %v2992_v45 }
 0x1ad   : > { %1708 = vmatmul.mubr.bf16.gmra.mrb[20].mxu0 %v3541_v35  ;;  %2718 = vmatpush3.bf16.msra.mxu1 %v2991_v44 }
 0x1ae   : > { %2719 = vmatprep.subr.bf16.mxu1 %v2994_v47  ;;  %1441 = vmatprep.mubr.bf16.mxu1 %v1190_v51 }
 0x1af   : > { %2624 = vmatpush3.bf16.msra.mxu0 %v2993_v46  ;;  %1715 = vmatprep.mubr.bf16.mxu0 %v1139_v42 }
 0x1b0   : > { %2625 = vmatprep.subr.bf16.mxu0 %v2995_v49 }
 0x1b1   : > { %2720 = vmatpush3.bf16.msra.mxu1 %v2994_v47 }
 0x1b2   : > { %2721 = vmatprep.subr.bf16.mxu1 %v2997_v53 }
 0x1b3   : > { %2626 = vmatpush3.bf16.msra.mxu0 %v2996_v52 }
 0x1b4   : > { %1442 = vmatmul.mubr.bf16.gmra.mrb[12].mxu1 %v1189_v55  ;;  %2627 = vmatprep.subr.bf16.mxu0 %v2998_v54 }
 0x1b5   : > { %1716 = vmatmul.mubr.bf16.gmra.mrb[24].mxu0 %v3544_v43  ;;  %2722 = vmatpush3.bf16.msra.mxu1 %v2997_v53 }
 0x1b6   : > { %2723 = vmatprep.subr.bf16.mxu1 %v3000_v56  ;;  %2026 = vmatprep.mubr.bf16.mxu0 %v1136_v34 }
 0x1b7   : > { %2628 = vmatpush3.bf16.msra.mxu0 %v2999_v57  ;;  %2725 = vmatprep.mubr.bf16.mxu1 %v1134_v60 }
 0x1b8   : > { %2629 = vmatprep.subr.bf16.mxu0 %v3001_v15 }
 0x1b9   : > { %2724 = vmatpush3.bf16.msra.mxu1 %v3000_v56 }
 0x1ba   : > { %2733 = vmatprep.subr.bf16.mxu1 %v3003_v61 }
 0x1bb   : > { %2630 = vmatpush3.bf16.msra.mxu0 %v3002_v62 }
 0x1bc   : > { %2726 = vmatmul.mubr.bf16.vlgmr.msra.gmra.mrb[16].mxu1 %v1137_v63 }
 0x1bd   : > { %2734 = vmatpush3.bf16.msra.mxu1 %v3003_v61  ;;  %2729 = vmatprep.mubr.bf16.mxu1 %v3549_v1 }
 0x1be   : > { %2027 = vmatmul.mubr.bf16.vlgmr.msra.gmra.mrb[28].mxu0 %v3541_v35  ;;  %2735 = vmatprep.subr.bf16.mxu1 %v3004_v0 }
 0x1bf   : > { %2034 = vmatprep.mubr.bf16.mxu0 %v1139_v42 }
 0x1c1   : > { %2736 = vmatpush3.bf16.msra.mxu1 %v3004_v0 }
 0x1c2   : > { %2737 = vmatprep.subr.bf16.mxu1 %v3005_v2 }
 0x1c4   : > { %2730 = vmatmul.mubr.bf16.gmra.mrb[20].mxu1 %v1191_v4 }
 0x1c5   : > { %2738 = vmatpush3.bf16.msra.mxu1 %v3005_v2  ;;  %2749 = vmatprep.mubr.bf16.mxu1 %v1131_v50 }
 0x1c6   : > { %2035 = vmatmul.mubr.bf16.gmra.mrb[32].mxu0 %v3544_v43  ;;  %2739 = vmatprep.subr.bf16.mxu1 %v3006_v3 }
 0x1c7   : > { %2042 = vmatprep.mubr.bf16.mxu0 %v1190_v51 }
 0x1c9   : > { %2740 = vmatpush3.bf16.msra.mxu1 %v3006_v3 }
 0x1ca   : > { %2741 = vmatprep.subr.bf16.mxu1 %v3007_v58 }
 0x1cd   : > { %2742 = vmatpush3.bf16.msra.mxu1 %v3007_v58 }
 0x1ce   : > { %2043 = vmatmul.mubr.bf16.gmra.mrb[36].mxu0 %v1189_v55  ;;  %2743 = vmatprep.subr.bf16.mxu1 %v3008_v59 }
 0x1cf   : > { %2050 = vmatprep.mubr.bf16.mxu0 %v1799_v5 }
 0x1d1   : > { %2744 = vmatpush3.bf16.msra.mxu1 %v3008_v59 }
 0x1d2   : > { %2745 = vmatprep.subr.bf16.mxu1 %v3009_v7 }
 0x1d5   : > { %2746 = vmatpush3.bf16.msra.mxu1 %v3009_v7 }
 0x1d6   : > { %2051 = vmatmul.mubr.bf16.gmra.mrb[40].mxu0 %v1798_v9  ;;  %2747 = vmatprep.subr.bf16.mxu1 %v3010_v8 }
 0x1d9   : > { %2748 = vmatpush3.bf16.msra.mxu1 %v3010_v8 }
 0x1da   : > { %2757 = vmatprep.subr.bf16.mxu1 %v3011_v10 }
 0x1dc   : > { %2750 = vmatmul.mubr.bf16.vlgmr.msra.gmra.mrb[16].mxu1 %v1134_v60 }
 0x1dd   : > { %2758 = vmatpush3.bf16.msra.mxu1 %v3011_v10  ;;  %2753 = vmatprep.mubr.bf16.mxu1 %v1137_v63 }
 0x1de   : > { %2759 = vmatprep.subr.bf16.mxu1 %v3012_v11 }
 0x1e1   : > { %2760 = vmatpush3.bf16.msra.mxu1 %v3012_v11 }
 0x1e2   : > { %2761 = vmatprep.subr.bf16.mxu1 %v3013_v12 }
 0x1e4   : > { %2754 = vmatmul.mubr.bf16.gmra.mrb[20].mxu1 %v3549_v1 }
 0x1e5   : > { %2762 = vmatpush3.bf16.msra.mxu1 %v3013_v12  ;;  %2773 = vmatprep.mubr.bf16.mxu1 %v1137_v63 }
 0x1e6   : > { %2763 = vmatprep.subr.bf16.mxu1 %v3014_v13 }
 0x1e9   : > { %2764 = vmatpush3.bf16.msra.mxu1 %v3014_v13 }
 0x1ea   : > { %2765 = vmatprep.subr.bf16.mxu1 %v3015_v6 }
 0x1ed   : > { %2766 = vmatpush3.bf16.msra.mxu1 %v3015_v6 }
 0x1ee   : > { %2767 = vmatprep.subr.bf16.mxu1 %v3016_v14 }
 0x1f1   : > { %2768 = vmatpush3.bf16.msra.mxu1 %v3016_v14 }
 0x1f2   : > { %2769 = vmatprep.subr.bf16.mxu1 %v3017_v16 }
 0x1f5   : > { %2770 = vmatpush3.bf16.msra.mxu1 %v3017_v16 }
 0x1f6   : > { %2771 = vmatprep.subr.bf16.mxu1 %v3018_v17 }
 0x1f9   : > { %2772 = vmatpush3.bf16.msra.mxu1 %v3018_v17 }
 0x1fc   : > { %2774 = vmatmul.mubr.bf16.vlgmr.msra.gmra.mrb[16].mxu1 %v3549_v1 }
 0x1fd   : > { %2777 = vmatprep.mubr.bf16.mxu1 %v1191_v4 }
 0x204   : > { %2778 = vmatmul.mubr.bf16.gmra.mrb[20].mxu1 %v1800_v19 }
 0x26f   : > { %v2527_v20 = vpop.f32.mrb[0].mxu1 }
 0x270   : > { %v2579_v21 = vpop.f32.mrb[12].mxu0  ;;  %v2528_v23 = vpop.f32.mrb[1].mxu1 }
 0x271   : > { %v2529_v24 = vadd.f32 %v2528_v23, %v2527_v20  ;;  %v2580_v18 = vpop.f32.mrb[13].mxu0  ;;  %v2530_v25 = vpop.f32.mrb[2].mxu1 }
 0x272   : > { %v2581_v26 = vadd.f32 %v2580_v18, %v2579_v21  ;;  %v2582_v27 = vpop.f32.mrb[14].mxu0  ;;  %v2531_v28 = vpop.f32.mrb[3].mxu1 }
 0x273   : > { %v2532_v30 = vadd.f32 %v2531_v28, %v2530_v25  ;;  %v2583_v31 = vpop.f32.mrb[15].mxu0 }
 0x274   : > { %v2784_v32 = vadd.f32 %v2581_v26, %v2529_v24  ;;  %v2584_v22 = vadd.f32 %v2583_v31, %v2582_v27 }
 0x276   : > { %v2790_v48 = vadd.f32 %v2584_v22, %v2532_v30 }
 0x277   : > { %v2533_v29 = vpop.f32.mrb[4].mxu1 }
 0x278   : > { %v2585_v33 = vpop.f32.mrb[16].mxu0  ;;  %v2534_v34 = vpop.f32.mrb[5].mxu1 }
 0x279   : > { %v2535_v35 = vadd.f32 %v2534_v34, %v2533_v29  ;;  %v2586_v36 = vpop.f32.mrb[17].mxu0  ;;  %v2536_v37 = vpop.f32.mrb[6].mxu1 }
 0x27a   : > { %v2587_v38 = vadd.f32 %v2586_v36, %v2585_v33  ;;  %v2588_v39 = vpop.f32.mrb[18].mxu0  ;;  %v2537_v40 = vpop.f32.mrb[7].mxu1 }
 0x27b   : > { %v2538_v41 = vadd.f32 %v2537_v40, %v2536_v37  ;;  %v2589_v42 = vpop.f32.mrb[19].mxu0 }
 0x27c   : > { %v2781_v43 = vadd.f32 %v2587_v38, %v2535_v35  ;;  %v2590_v44 = vadd.f32 %v2589_v42, %v2588_v39 }
 0x27e   : > { %v2787_v45 = vadd.f32 %v2590_v44, %v2538_v41 }
 0x27f   : > { %v2539_v46 = vpop.f32.mrb[8].mxu1 }
 0x280   : > { %v2591_v47 = vpop.f32.mrb[20].mxu0  ;;  %v2540_v49 = vpop.f32.mrb[9].mxu1 }
 0x281   : > { %v2541_v51 = vadd.f32 %v2540_v49, %v2539_v46  ;;  %v2592_v52 = vpop.f32.mrb[21].mxu0  ;;  %v2542_v53 = vpop.f32.mrb[10].mxu1  ;;  %v2444_v46 = vld [vmem:[%s3636_s6] ss:$0 sm:$0xff] }
 0x282   : > { %v2593_v54 = vadd.f32 %v2592_v52, %v2591_v47  ;;  %v2594_v55 = vpop.f32.mrb[22].mxu0  ;;  %v2543_v56 = vpop.f32.mrb[11].mxu1 }
 0x283   : > { %v2544_v57 = vadd.f32 %v2543_v56, %v2542_v53  ;;  %v2595_v15 = vpop.f32.mrb[23].mxu0 }
 0x284   : > { %v2796_v60 = vadd.f32 %v2593_v54, %v2541_v51  ;;  %v2596_v61 = vadd.f32 %v2595_v15, %v2594_v55 }
 0x286   : > { %v2802_v62 = vadd.f32 %v2596_v61, %v2544_v57 }
 0x287   : > { %v2545_v63 = vpop.f32.mrb[12].mxu1 }
 0x288   : > { %v2597_v0 = vpop.f32.mrb[24].mxu0  ;;  %v2546_v1 = vpop.f32.mrb[13].mxu1 }
 0x289   : > { %v2547_v2 = vadd.f32 %v2546_v1, %v2545_v63  ;;  %v2598_v3 = vpop.f32.mrb[25].mxu0  ;;  %v2548_v4 = vpop.f32.mrb[14].mxu1 }
 0x28a   : > { %v2599_v50 = vadd.f32 %v2598_v3, %v2597_v0  ;;  %v2600_v58 = vpop.f32.mrb[26].mxu0  ;;  %v2549_v59 = vpop.f32.mrb[15].mxu1 }
 0x28b   : > { %v2550_v5 = vadd.f32 %v2549_v59, %v2548_v4  ;;  %v2601_v7 = vpop.f32.mrb[27].mxu0 }
 0x28c   : > { %v2793_v8 = vadd.f32 %v2599_v50, %v2547_v2  ;;  %v2602_v9 = vadd.f32 %v2601_v7, %v2600_v58 }
 0x28e   : > { %v2799_v10 = vadd.f32 %v2602_v9, %v2550_v5 }
 0x291   : > { %v2631_v11 = vpop.f32.mrb[28].mxu0 }
 0x292   : > { %v2632_v12 = vpop.f32.mrb[29].mxu0 }
 0x293   : > { %v2633_v13 = vadd.f32 %v2632_v12, %v2631_v11  ;;  %v2634_v6 = vpop.f32.mrb[30].mxu0 }
 0x294   : > { %v2635_v14 = vpop.f32.mrb[31].mxu0 }
 0x295   : > { %v2636_v16 = vadd.f32 %v2635_v14, %v2634_v6  ;;  %v2785_v17 = vadd.f32 %v2784_v32, %v2633_v13 }
 0x297   : > { %v2791_v19 = vadd.f32 %v2790_v48, %v2636_v16 }
 0x299   : > { %v2637_v20 = vpop.f32.mrb[32].mxu0 }
 0x29a   : > { %v2638_v21 = vpop.f32.mrb[33].mxu0 }
 0x29b   : > { %v2639_v23 = vadd.f32 %v2638_v21, %v2637_v20  ;;  %v2640_v24 = vpop.f32.mrb[34].mxu0 }
 0x29c   : > { %v2641_v18 = vpop.f32.mrb[35].mxu0 }
 0x29d   : > { %v2642_v25 = vadd.f32 %v2641_v18, %v2640_v24  ;;  %v2782_v26 = vadd.f32 %v2781_v43, %v2639_v23  ;;  %v2443_v43 = vld [vmem:[%s3635_s5] ss:$0 sm:$0xff] }
 0x29f   : > { %v2788_v27 = vadd.f32 %v2787_v45, %v2642_v25 }
 0x2a1   : > { %v2643_v28 = vpop.f32.mrb[36].mxu0 }
 0x2a2   : > { %v2644_v30 = vpop.f32.mrb[37].mxu0 }
 0x2a3   : > { %v2645_v31 = vadd.f32 %v2644_v30, %v2643_v28  ;;  %v2646_v22 = vpop.f32.mrb[38].mxu0 }
 0x2a4   : > { %v2647_v29 = vpop.f32.mrb[39].mxu0 }
 0x2a5   : > { %v2648_v33 = vadd.f32 %v2647_v29, %v2646_v22  ;;  %v2797_v34 = vadd.f32 %v2796_v60, %v2645_v31 }
 0x2a7   : > { %v2803_v35 = vadd.f32 %v2802_v62, %v2648_v33 }
 0x2a9   : > { %v2649_v36 = vpop.f32.mrb[40].mxu0 }
 0x2aa   : > { %v2650_v37 = vpop.f32.mrb[41].mxu0 }
 0x2ab   : > { %v2651_v32 = vadd.f32 %v2650_v37, %v2649_v36  ;;  %v2652_v48 = vpop.f32.mrb[42].mxu0 }
 0x2ac   : > { %v2653_v38 = vpop.f32.mrb[43].mxu0 }
 0x2ad   : > { %v2654_v39 = vadd.f32 %v2653_v38, %v2652_v48  ;;  %v2794_v40 = vadd.f32 %v2793_v8, %v2651_v32 }
 0x2af   : > { %v2800_v41 = vadd.f32 %v2799_v10, %v2654_v39 }
 0x2cf   : > { %v2775_v42 = vpop.f32.mrb[16].mxu1 }
 0x2d0   : > { %v2783_v44 = vadd.f32 %v2782_v26, %v2775_v42  ;;  %v2093_v45 = vpop.f32.mrb[17].mxu1 }
 0x2d1   : > { %v2786_v47 = vadd.f32 %v2785_v17, %v2093_v45  ;;  %v2776_v49 = vpop.f32.mrb[18].mxu1 }
 0x2d2   : > { %v2141_v51 = vmul.f32 %v2783_v44, %v2443_v43  ;;  %v2789_v52 = vadd.f32 %v2788_v27, %v2776_v49  ;;  %v2096_v53 = vpop.f32.mrb[19].mxu1 }
 0x2d3   : > { %v2139_v54 = vmul.f32 %v2786_v47, %v2443_v43  ;;  %v2792_v55 = vadd.f32 %v2791_v19, %v2096_v53 }
 0x2d4   : > { %v2156_v56 = vadd.f32 %v2444_v46, %v2141_v51  ;;  %v2142_v57 = vmul.f32 %v2789_v52, %v2443_v43 }
 0x2d5   : > { %v2154_v15 = vadd.f32 %v2444_v46, %v2139_v54  ;;  %v2140_v60 = vmul.f32 %v2792_v55, %v2443_v43 }
 0x2d6   : > { %v2157_v61 = vadd.f32 %v2444_v46, %v2142_v57  ;;  %v2164_v0 = vmax.f32 %v2156_v56, 0.0 }
 0x2d7   : > { %v2155_v62 = vadd.f32 %v2444_v46, %v2140_v60  ;;  %v2779_v63 = vpop.f32.mrb[20].mxu1  ;;  %v2162_v4 = vmax.f32 %v2154_v15, 0.0 }
 0x2d8   : > { %v2165_v1 = vmax.f32 %v2157_v61, 0.0  ;;  %v2795_v2 = vadd.f32 %v2794_v40, %v2779_v63  ;;  %v2109_v3 = vpop.f32.mrb[21].mxu1 }
 0x2d9   : > { %v2163_v50 = vmax.f32 %v2155_v62, 0.0  ;;  %v2798_v58 = vadd.f32 %v2797_v34, %v2109_v3  ;;  %v2780_v59 = vpop.f32.mrb[22].mxu1 }
 0x2da   : > { %v2475_v5 = vpack.c.bf16 %v2165_v1, %v2164_v0  ;;  %v2145_v7 = vmul.f32 %v2795_v2, %v2443_v43  ;;  %v2801_v8 = vadd.f32 %v2800_v41, %v2780_v59  ;;  %v2112_v9 = vpop.f32.mrb[23].mxu1 }
 0x2db   : > { %v2470_v10 = vpack.c.bf16 %v2163_v50, %v2162_v4  ;;  %v2143_v11 = vmul.f32 %v2798_v58, %v2443_v43  ;;  %v2804_v12 = vadd.f32 %v2803_v35, %v2112_v9 }
 0x2dc   : > { %2487 = vst [vmem:[%s3537_s14 + $0x8] sm:$0xff] %v2475_v5   ;;  %v2160_v13 = vadd.f32 %v2444_v46, %v2145_v7  ;;  %v2146_v6 = vmul.f32 %v2801_v8, %v2443_v43 }
 0x2dd   : > { %2471 = vst [vmem:[%s3537_s14] sm:$0xff] %v2470_v10   ;;  %v2158_v14 = vadd.f32 %v2444_v46, %v2143_v11  ;;  %v2144_v16 = vmul.f32 %v2804_v12, %v2443_v43 }
 0x2de   : > { %v2161_v17 = vadd.f32 %v2444_v46, %v2146_v6  ;;  %v2168_v20 = vmax.f32 %v2160_v13, 0.0 }
 0x2df   : > { %v2159_v19 = vadd.f32 %v2444_v46, %v2144_v16  ;;  %v2166_v23 = vmax.f32 %v2158_v14, 0.0 }
 0x2e0   : > { %v2169_v21 = vmax.f32 %v2161_v17, 0.0 }
 0x2e1   : > { %v2167_v24 = vmax.f32 %v2159_v19, 0.0 }
 0x2e2   : > { %v2485_v18 = vpack.c.bf16 %v2169_v21, %v2168_v20 }
 0x2e3   : > { %v2480_v25 = vpack.c.bf16 %v2167_v24, %v2166_v23 }
 0x2e4   : > { %2489 = vst [vmem:[%s3537_s14 + $0x18] sm:$0xff] %v2485_v18  }
 0x2e5   : > { %2488 = vst [vmem:[%s3537_s14 + $0x10] sm:$0xff] %v2480_v25  }
 0x2e6   : > { %3060 = shalt.err (!%p3057_p13)
}
 0x2e7   : > { %s3061_s14 = scalar_lea.hbm %s3570_s12, 512  ;;  %s3065_s27 = scalar_lea.hbm %s3637_s7, 4096 }
 0x2e8   : > { %p3062_p1 = scmp.ne.s32.totalorder %s3570_s12, %s3061_s14  ;;  %p3066_p8 = scmp.lt.u32.totalorder %s3570_s12, %s3637_s7 }
 0x2e9   : > { %p3067_p10 = scmp.lt.u32.totalorder %s3065_s27, %s3061_s14  ;;  %p3069_p0 = scmp.lt.u32.totalorder %s3061_s14, %s3570_s12 }
 0x2ea   : > { %p3063_p4 = pnand %p3062_p1, %p3679_p2 }
 0x2eb   : > { %p3068_p12 = por %p3067_p10, %p3066_p8 }
 0x2ec   : > { %p3064_p3 = pneg %p3063_p4 }
 0x2ed   : > { %p3070_p5 = por %p3069_p0, %p3068_p12 }
 0x2ef   : > { %p3071_p6 = pnand %p3070_p5, %p3064_p3 }
 0x2f1   : > { %3074 = shalt.err (!%p3071_p6)
}
 0x2f2   : > { %s3153_s11 = smov 64   ;;  %s3154_s17 = smov 4  }
 0x2f3   : > { %2852 = dma.vmem_to_hbm [thread:$0]  (%p3679_p2), %s3572_s28, 512, %s3570_s12, %s3578_s10, %s3153_s11, %s3153_s11, %s3154_s17  }
 0x2f4 PF: > { %p2864_p7 = scmp.ge.s32.totalorder %s3145_s8, 2  ;;  %s2241_s18 = sand.u32 1, %s3117_s24  }
 0x2f5   : > { %p3680_p9 = scmp.ne.s32.totalorder %s3648_s16, 0  ;;  %s2242_s19 = scalar_lea.sflag [#allocation5], %s2241_s18 }
 0x2f7   : > { %p2859_p11 = pnand %p2864_p7, %p3680_p9 }
 0x2f9   : > { %3112 = dma.done.wait (!%p2859_p11), %s2242_s19, 512  }
 0x2fa   : > { %3114 = vsyncadd (!%p2859_p11), %s2242_s19, 4294966784  ;;  %s21_s8 = sadd.s32 1, %s3145_s8   ;;  %s3681_s15 = sld [smem:[#allocation9_spill]] }
 0x2fb   : > { %p18_p13 = scmp.ge.s32.totalorder %s21_s8, 10   ;;  %s3682_s12 = sld [smem:[#allocation10_spill]] }
 0x2fc   : > { %s3683_s24 = smov %s3121_s25  ;;  %s3684_s25 = smov %s3125_s26 }
 0x2fd   : > { %s3685_s26 = smov %s3274_s21  ;;  %s3686_s27 = smov %s3137_s29 }
 0x2fe   : > { %s3687_s28 = smov %s3141_s30  ;;  %20 = sbr.rel (!%p18_p13) target bundleno = 6 (0x6), region = 100 }
 0x300   : > { %s3688_s29 = smov %s3681_s15 }
 0x301   : > { %s3689_s30 = smov %s3682_s12 }
 0x305   :  { %2247 = vsyncpa [#allocation4], 1 }
 0x306   :  { %2249 = vsyncpa [#allocation4 + $0x1], 1 }
 0x307   :  { %2250 = vsyncpa [#allocation5], 1 }
 0x308   :  { %2252 = vsyncpa [#allocation5 + $0x1], 1 }

</bundles_post_ra>
